<compile_context>
chip_gen: v7x
topology: tpu7x:2x2x1
jax: 0.10.0
libtpu: 0.0.40
codegen_flags: <defaults>
</compile_context>

<pallas_src>
import math

import jax
import jax.numpy as jnp
from jax.experimental import pallas as pl
from jax.experimental.pallas import tpu as pltpu


_SUBLANES = 8  # vreg sublane count: carrying state at 8 rows costs no extra vregs


def _bilstm_kernel(x2_ref,
                   wih0_ref, whh0_ref, b0_ref,
                   wih1_ref, whh1_ref, b1_ref,
                   fcw_ref, fcb_ref,
                   out_ref,
                   seq0_ref, seq1_ref):
    """Fused-direction 2-layer BiLSTM + FC + sigmoid, single program, all in VMEM/vregs.

    Fused gate layout (lane axis, width 8H): [i, f, o, g], each 2H-wide block
    internally [fwd H | bwd H].  Carried state h/c layout: [fwd H | bwd H].
    At step s the forward direction processes time t = s and the backward
    direction processes time t = T-1-s.

    seq*_ref scratch (T, 4H): row r lanes [0,2H) hold the fused h of step r
    (i.e. [h_fwd(r) | h_bwd(T-1-r)]), lanes [2H,4H) hold the fused h of step
    T-1-r ([h_fwd(T-1-r) | h_bwd(r)]) — so the next layer / classifier can read
    it directly (their weights are row-permuted in the wrapper to match).
    """
    T = x2_ref.shape[0]
    G = whh0_ref.shape[0]          # per-gate lane width = 2H  ([fwd | bwd])
    GATES = whh0_ref.shape[1]      # 8H
    SIGW = 3 * G                   # contiguous i|f|o lanes -> one EUP pass

    def sigmoid(v):
        # sigmoid(x) == 0.5*tanh(0.5*x) + 0.5 : single EUP push per vreg.
        return 0.5 * jnp.tanh(0.5 * v) + 0.5

    def fused_layer(x2, w_ih, w_hh, bias, seq_ref):
        # Input projection + bias for ALL timesteps: one hoisted MXU matmul.
        pre = jnp.dot(x2, w_ih, preferred_element_type=jnp.float32) + bias   # (T, 8H)
        # Pre-split & sublane-broadcast per-step rows: the extract/broadcast is
        # independent of h, so it stays off the recurrence critical path.
        pre_rows = [jnp.broadcast_to(pre[s:s + 1, :], (_SUBLANES, GATES))
                    for s in range(T)]
        # State carried at the vreg-native 8-sublane shape (rows identical):
        # same VPU/EUP cost as 1 row, and the (8,2H)@(2H,8H) recurrent matmul
        # is guaranteed to lower to the MXU.
        h = jnp.zeros((_SUBLANES, G), jnp.float32)
        c = jnp.zeros((_SUBLANES, G), jnp.float32)
        for s in range(T):                              # fully unrolled (T static, small)
            gates = pre_rows[s] + jnp.dot(h, w_hh,
                                          preferred_element_type=jnp.float32)  # (8, 8H)
            sig = sigmoid(gates[:, :SIGW])              # i | f | o in one slab
            i_g = sig[:, 0:G]
            f_g = sig[:, G:2 * G]
            o_g = sig[:, 2 * G:SIGW]
            g_g = jnp.tanh(gates[:, SIGW:])
            c = f_g * c + i_g * g_g
            h = o_g * jnp.tanh(c)
            # Writeback (off the recurrence chain): time order into lanes [0,2H),
            # reversed time order into lanes [2H,4H).
            seq_ref[s:s + 1, 0:G] = h[0:1, :]
            seq_ref[T - 1 - s:T - s, G:2 * G] = h[0:1, :]

    # ---- layer 0 ------------------------------------------------------------
    fused_layer(x2_ref[...], wih0_ref[...], whh0_ref[...], b0_ref[...], seq0_ref)
    # ---- layer 1 (input read straight from the layer-0 scratch) -------------
    fused_layer(seq0_ref[...], wih1_ref[...], whh1_ref[...], b1_ref[...], seq1_ref)

    # ---- classifier on out[-1, :, :] (last-batch-row sequence), time order ---
    logits = jnp.dot(seq1_ref[...], fcw_ref[...],
                     preferred_element_type=jnp.float32) + fcb_ref[...]       # (T, 1)
    out_ref[...] = sigmoid(logits)


# -----------------------------------------------------------------------------
# One-time weight fusion (cache the result; it is x-independent).
# -----------------------------------------------------------------------------
def _gate_reorder(w, H):
    """(4H, F) PyTorch gate order [i,f,g,o] -> (4, H, F) in order [i, f, o, g]."""
    g = w.reshape(4, H, -1)
    return jnp.stack([g[0], g[1], g[3], g[2]], axis=0)


def _fuse_direction_pair(w_f, w_b, H):
    """Two per-direction (4H, F) weights -> one fused, pre-transposed (2F, 8H).

    Rows [0,F) multiply the forward-direction input, rows [F,2F) the
    backward-direction input.  Columns are gate-major [i, f, o, g], each 2H-wide
    block internally [fwd H | bwd H]."""
    F = w_f.shape[1]
    gf = _gate_reorder(w_f, H).transpose(0, 2, 1)      # (4, F, H)
    gb = _gate_reorder(w_b, H).transpose(0, 2, 1)      # (4, F, H)
    z = jnp.zeros_like(gf)
    top = jnp.concatenate([gf, z], axis=2)             # fwd input rows -> fwd lanes
    bot = jnp.concatenate([z, gb], axis=2)             # bwd input rows -> bwd lanes
    blk = jnp.concatenate([top, bot], axis=1)          # (4, 2F, 2H)
    return blk.transpose(1, 0, 2).reshape(2 * F, 8 * H)


def _fuse_bias(b_f, b_b, H):
    bf = b_f.reshape(4, H)
    bb = b_b.reshape(4, H)
    bf = jnp.stack([bf[0], bf[1], bf[3], bf[2]], axis=0)
    bb = jnp.stack([bb[0], bb[1], bb[3], bb[2]], axis=0)
    return jnp.concatenate([bf, bb], axis=1).reshape(1, 8 * H)


def fuse_params(params, hidden_size):
    """Build fused/pre-transposed kernel weights once (cache across calls)."""
    H = hidden_size

    def layer_weights(layer):
        w_ih = _fuse_direction_pair(params[f"weight_ih_l{layer}"],
                                    params[f"weight_ih_l{layer}_reverse"], H)
        w_hh = _fuse_direction_pair(params[f"weight_hh_l{layer}"],
                                    params[f"weight_hh_l{layer}_reverse"], H)
        bias = _fuse_bias(params[f"bias_ih_l{layer}"] + params[f"bias_hh_l{layer}"],
                          params[f"bias_ih_l{layer}_reverse"]
                          + params[f"bias_hh_l{layer}_reverse"], H)
        return w_ih, w_hh, bias

    wih0, whh0, b0 = layer_weights(0)
    wih1, whh1, b1 = layer_weights(1)

    # Layer-1 input rows arrive from the scratch in column order
    # [h_fwd0(t), h_bwd0(T-1-t), h_fwd0(T-1-t), h_bwd0(t)]; permute the fused
    # weight's H-row blocks from the standard [fwd(t) fwd|bwd, bwd(T-1-t) fwd|bwd]
    # order to match (block permutation [0, 3, 2, 1]).
    wih1 = jnp.concatenate([wih1[0:H], wih1[3 * H:4 * H],
                            wih1[2 * H:3 * H], wih1[H:2 * H]], axis=0)

    # Classifier weight, padded to the (T, 4H) scratch layout of layer 1:
    # rows [0,H) hit h_fwd1(t), rows [3H,4H) hit h_bwd1(t), middle rows are zero.
    fc_w = params["fc_weight"][0]                                   # (2H,)
    fcw = jnp.concatenate([fc_w[:H], jnp.zeros((2 * H,), jnp.float32),
                           fc_w[H:]]).reshape(4 * H, 1)
    fcb = params["fc_bias"].reshape(1, 1).astype(jnp.float32)
    return (wih0, whh0, b0, wih1, whh1, b1, fcw, fcb)


def bilstm_classifier_forward(x, fused):
    """x: (B, T, input_size) float32, fused = fuse_params(...) -> (T, 1) float32."""
    wih0, whh0, b0, wih1, whh1, b1, fcw, fcb = fused
    B, T, _ = x.shape
    H4 = fcw.shape[0]                                   # 4H (scratch lane width)

    # out[-1, :, :] only depends on the LAST batch row (LSTM rows are independent):
    # drop the dead rows — bit-identical result, 1/B of the recurrent work.
    x_last = x[B - 1].astype(jnp.float32)               # (T, I)
    # Fused-direction input: row s = [x(s) | x(T-1-s)].
    x2_0 = jnp.concatenate([x_last, x_last[::-1]], axis=1)          # (T, 2I)

    args = (x2_0, wih0, whh0, b0, wih1, whh1, b1, fcw, fcb)
    vmem = pl.BlockSpec(memory_space=pltpu.MemorySpace.VMEM)
    # TODO(synk): if many sequences are processed, add a leading "parallel" grid
    # axis over sequences (weights via broadcast index_map) to use both v7x TCs
    # and amortize the pallas_call overhead.
    return pl.pallas_call(
        _bilstm_kernel,
        out_shape=jax.ShapeDtypeStruct((T, 1), jnp.float32),
        in_specs=[vmem] * len(args),
        out_specs=vmem,
        scratch_shapes=[pltpu.VMEM((T, H4), jnp.float32),
                        pltpu.VMEM((T, H4), jnp.float32)],
    )(*args)


# -----------------------------------------------------------------------------
# Reference & test
# -----------------------------------------------------------------------------
def init_params(key, input_size, hidden_size, num_layers=2):
    """Deterministic PyTorch-style LSTM init: uniform(-1/sqrt(H), 1/sqrt(H))."""
    H = hidden_size
    bound = 1.0 / math.sqrt(H)
    n_keys = num_layers * 2 * 4 + 2
    keys = jax.random.split(key, n_keys)

    def uni(k, shape):
        return jax.random.uniform(k, shape, jnp.float32, -bound, bound)

    params = {}
    idx = 0
    for layer in range(num_layers):
        in_sz = input_size if layer == 0 else 2 * H
        for suffix in ("", "_reverse"):
            params[f"weight_ih_l{layer}{suffix}"] = uni(keys[idx], (4 * H, in_sz)); idx += 1
            params[f"weight_hh_l{layer}{suffix}"] = uni(keys[idx], (4 * H, H)); idx += 1
            params[f"bias_ih_l{layer}{suffix}"] = uni(keys[idx], (4 * H,)); idx += 1
            params[f"bias_hh_l{layer}{suffix}"] = uni(keys[idx], (4 * H,)); idx += 1
    params["fc_weight"] = uni(keys[idx], (1, 2 * H)); idx += 1
    params["fc_bias"] = uni(keys[idx], (1,)); idx += 1
    return params


def reference_forward(x, params):
    """Pure-JAX full-batch reference matching PyTorch nn.LSTM semantics."""
    B, T, _ = x.shape
    H = params["weight_hh_l0"].shape[1]

    def lstm_dir(inputs, w_ih, w_hh, b_ih, b_hh, reverse):
        seq = inputs[:, ::-1, :] if reverse else inputs

        def step(carry, xt):
            h, c = carry
            gates = xt @ w_ih.T + h @ w_hh.T + b_ih + b_hh
            i = jax.nn.sigmoid(gates[:, :H])
            f = jax.nn.sigmoid(gates[:, H:2 * H])
            g = jnp.tanh(gates[:, 2 * H:3 * H])
            o = jax.nn.sigmoid(gates[:, 3 * H:])
            c = f * c + i * g
            h = o * jnp.tanh(c)
            return (h, c), h

        init = (jnp.zeros((B, H), jnp.float32), jnp.zeros((B, H), jnp.float32))
        _, hs = jax.lax.scan(step, init, jnp.swapaxes(seq, 0, 1))
        hs = jnp.swapaxes(hs, 0, 1)
        if reverse:
            hs = hs[:, ::-1, :]
        return hs

    h = x
    for layer in range(2):
        fwd = lstm_dir(h, params[f"weight_ih_l{layer}"], params[f"weight_hh_l{layer}"],
                       params[f"bias_ih_l{layer}"], params[f"bias_hh_l{layer}"], False)
        bwd = lstm_dir(h, params[f"weight_ih_l{layer}_reverse"],
                       params[f"weight_hh_l{layer}_reverse"],
                       params[f"bias_ih_l{layer}_reverse"],
                       params[f"bias_hh_l{layer}_reverse"], True)
        h = jnp.concatenate([fwd, bwd], axis=-1)
    last = h[-1]                                    # out[-1, :, :] -> (T, 2H)
    logits = last @ params["fc_weight"].T + params["fc_bias"]
    return jax.nn.sigmoid(logits)


if __name__ == "__main__":
    B, T, INPUT_SIZE, HIDDEN = 2, 8, 16, 32
    key = jax.random.PRNGKey(0)
    kx, kp = jax.random.split(key)
    x = jax.random.normal(kx, (B, T, INPUT_SIZE), jnp.float32)
    params = init_params(kp, INPUT_SIZE, HIDDEN, num_layers=2)

    # Weight fusion is x-independent: build once and cache; steady-state calls
    # only pay for the kernel itself.
    fused = fuse_params(params, HIDDEN)
    forward = jax.jit(bilstm_classifier_forward)

    out = jax.block_until_ready(forward(x, fused))

    ref = reference_forward(x, params)
    assert out.shape == (T, 1), out.shape
    assert bool(jnp.all(jnp.isfinite(out)))
    assert bool(jnp.allclose(out, ref, atol=1e-3, rtol=1e-3)), (out, ref)

    print("KERNEL_OK")
</pallas_src>

<mosaic_0001>
module attributes {stable_mosaic.version = 11 : i64} {
  func.func @_bilstm_kernel(%arg0: memref<8x32xf32, #tpu.memory_space<vmem>>, %arg1: memref<32x256xf32, #tpu.memory_space<vmem>>, %arg2: memref<64x256xf32, #tpu.memory_space<vmem>>, %arg3: memref<1x256xf32, #tpu.memory_space<vmem>>, %arg4: memref<128x256xf32, #tpu.memory_space<vmem>>, %arg5: memref<64x256xf32, #tpu.memory_space<vmem>>, %arg6: memref<1x256xf32, #tpu.memory_space<vmem>>, %arg7: memref<128x1xf32, #tpu.memory_space<vmem>>, %arg8: memref<1x1xf32, #tpu.memory_space<vmem>>, %arg9: memref<8x1xf32, #tpu.memory_space<vmem>>, %arg10: memref<8x128xf32, #tpu.memory_space<vmem>>, %arg11: memref<8x128xf32, #tpu.memory_space<vmem>>) attributes {dimension_semantics = [], scalar_prefetch = 0 : i64, scratch_operands = 2 : i64, tpu.core_type = #tpu.core_type<tc>} {
    %c0 = arith.constant 0 : index
    %c0_0 = arith.constant 0 : index
    %0 = vector.load %arg0[%c0, %c0_0] : memref<8x32xf32, #tpu.memory_space<vmem>>, vector<8x32xf32>
    %c0_1 = arith.constant 0 : index
    %c0_2 = arith.constant 0 : index
    %1 = vector.load %arg1[%c0_1, %c0_2] : memref<32x256xf32, #tpu.memory_space<vmem>>, vector<32x256xf32>
    %c0_3 = arith.constant 0 : index
    %c0_4 = arith.constant 0 : index
    %2 = vector.load %arg2[%c0_3, %c0_4] : memref<64x256xf32, #tpu.memory_space<vmem>>, vector<64x256xf32>
    %c0_5 = arith.constant 0 : index
    %c0_6 = arith.constant 0 : index
    %3 = vector.load %arg3[%c0_5, %c0_6] : memref<1x256xf32, #tpu.memory_space<vmem>>, vector<1x256xf32>
    %cst = arith.constant dense<0.000000e+00> : vector<8x256xf32>
    %4 = tpu.matmul %0, %1, %cst {dimension_numbers = #tpu.dot_dimension_numbers<[1], [0], [0], [1], [0, 0, 1, 1], [], []>} : vector<8x32xf32>, vector<32x256xf32>, vector<8x256xf32> -> vector<8x256xf32>
    %5 = vector.broadcast %3 : vector<1x256xf32> to vector<8x256xf32>
    %6 = arith.addf %4, %5 : vector<8x256xf32>
    %7 = vector.extract_strided_slice %6 {offsets = [0, 0], sizes = [1, 256], strides = [1, 1]} : vector<8x256xf32> to vector<1x256xf32>
    %8 = vector.shape_cast %7 : vector<1x256xf32> to vector<1x256xf32>
    %9 = vector.broadcast %8 : vector<1x256xf32> to vector<8x256xf32>
    %10 = vector.extract_strided_slice %6 {offsets = [1, 0], sizes = [1, 256], strides = [1, 1]} : vector<8x256xf32> to vector<1x256xf32>
    %11 = vector.shape_cast %10 : vector<1x256xf32> to vector<1x256xf32>
    %12 = vector.broadcast %11 : vector<1x256xf32> to vector<8x256xf32>
    %13 = vector.extract_strided_slice %6 {offsets = [2, 0], sizes = [1, 256], strides = [1, 1]} : vector<8x256xf32> to vector<1x256xf32>
    %14 = vector.shape_cast %13 : vector<1x256xf32> to vector<1x256xf32>
    %15 = vector.broadcast %14 : vector<1x256xf32> to vector<8x256xf32>
    %16 = vector.extract_strided_slice %6 {offsets = [3, 0], sizes = [1, 256], strides = [1, 1]} : vector<8x256xf32> to vector<1x256xf32>
    %17 = vector.shape_cast %16 : vector<1x256xf32> to vector<1x256xf32>
    %18 = vector.broadcast %17 : vector<1x256xf32> to vector<8x256xf32>
    %19 = vector.extract_strided_slice %6 {offsets = [4, 0], sizes = [1, 256], strides = [1, 1]} : vector<8x256xf32> to vector<1x256xf32>
    %20 = vector.shape_cast %19 : vector<1x256xf32> to vector<1x256xf32>
    %21 = vector.broadcast %20 : vector<1x256xf32> to vector<8x256xf32>
    %22 = vector.extract_strided_slice %6 {offsets = [5, 0], sizes = [1, 256], strides = [1, 1]} : vector<8x256xf32> to vector<1x256xf32>
    %23 = vector.shape_cast %22 : vector<1x256xf32> to vector<1x256xf32>
    %24 = vector.broadcast %23 : vector<1x256xf32> to vector<8x256xf32>
    %25 = vector.extract_strided_slice %6 {offsets = [6, 0], sizes = [1, 256], strides = [1, 1]} : vector<8x256xf32> to vector<1x256xf32>
    %26 = vector.shape_cast %25 : vector<1x256xf32> to vector<1x256xf32>
    %27 = vector.broadcast %26 : vector<1x256xf32> to vector<8x256xf32>
    %28 = vector.extract_strided_slice %6 {offsets = [7, 0], sizes = [1, 256], strides = [1, 1]} : vector<8x256xf32> to vector<1x256xf32>
    %29 = vector.shape_cast %28 : vector<1x256xf32> to vector<1x256xf32>
    %30 = vector.broadcast %29 : vector<1x256xf32> to vector<8x256xf32>
    %cst_7 = arith.constant 0.000000e+00 : f32
    %31 = vector.broadcast %cst_7 : f32 to vector<8x64xf32>
    %cst_8 = arith.constant 0.000000e+00 : f32
    %32 = vector.broadcast %cst_8 : f32 to vector<8x64xf32>
    %cst_9 = arith.constant dense<0.000000e+00> : vector<8x256xf32>
    %33 = tpu.matmul %31, %2, %cst_9 {dimension_numbers = #tpu.dot_dimension_numbers<[1], [0], [0], [1], [0, 0, 1, 1], [], []>} : vector<8x64xf32>, vector<64x256xf32>, vector<8x256xf32> -> vector<8x256xf32>
    %34 = arith.addf %9, %33 : vector<8x256xf32>
    %35 = vector.extract_strided_slice %34 {offsets = [0, 0], sizes = [8, 192], strides = [1, 1]} : vector<8x256xf32> to vector<8x192xf32>
    %cst_10 = arith.constant 5.000000e-01 : f32
    %36 = vector.broadcast %cst_10 : f32 to vector<8x192xf32>
    %37 = arith.mulf %36, %35 : vector<8x192xf32>
    %38 = math.tanh %37 : vector<8x192xf32>
    %cst_11 = arith.constant 5.000000e-01 : f32
    %39 = vector.broadcast %cst_11 : f32 to vector<8x192xf32>
    %40 = arith.mulf %39, %38 : vector<8x192xf32>
    %cst_12 = arith.constant 5.000000e-01 : f32
    %41 = vector.broadcast %cst_12 : f32 to vector<8x192xf32>
    %42 = arith.addf %40, %41 : vector<8x192xf32>
    %43 = vector.extract_strided_slice %42 {offsets = [0, 0], sizes = [8, 64], strides = [1, 1]} : vector<8x192xf32> to vector<8x64xf32>
    %44 = vector.extract_strided_slice %42 {offsets = [0, 64], sizes = [8, 64], strides = [1, 1]} : vector<8x192xf32> to vector<8x64xf32>
    %45 = vector.extract_strided_slice %42 {offsets = [0, 128], sizes = [8, 64], strides = [1, 1]} : vector<8x192xf32> to vector<8x64xf32>
    %46 = vector.extract_strided_slice %34 {offsets = [0, 192], sizes = [8, 64], strides = [1, 1]} : vector<8x256xf32> to vector<8x64xf32>
    %47 = math.tanh %46 : vector<8x64xf32>
    %48 = arith.mulf %44, %32 : vector<8x64xf32>
    %49 = arith.mulf %43, %47 : vector<8x64xf32>
    %50 = arith.addf %48, %49 : vector<8x64xf32>
    %51 = math.tanh %50 : vector<8x64xf32>
    %52 = arith.mulf %45, %51 : vector<8x64xf32>
    %53 = vector.extract_strided_slice %52 {offsets = [0, 0], sizes = [1, 64], strides = [1, 1]} : vector<8x64xf32> to vector<1x64xf32>
    %c0_13 = arith.constant 0 : index
    %c0_14 = arith.constant 0 : index
    %54 = vector.load %arg10[%c0_13, %c0_14] : memref<8x128xf32, #tpu.memory_space<vmem>>, vector<1x64xf32>
    tpu.vector_store %arg10[%c0_13, %c0_14], %53 {strides = array<i32>} : memref<8x128xf32, #tpu.memory_space<vmem>>, vector<1x64xf32>,
    %55 = vector.extract_strided_slice %52 {offsets = [0, 0], sizes = [1, 64], strides = [1, 1]} : vector<8x64xf32> to vector<1x64xf32>
    %c7 = arith.constant 7 : index
    %c64 = arith.constant 64 : index
    %56 = vector.load %arg10[%c7, %c64] : memref<8x128xf32, #tpu.memory_space<vmem>>, vector<1x64xf32>
    tpu.vector_store %arg10[%c7, %c64], %55 {strides = array<i32>} : memref<8x128xf32, #tpu.memory_space<vmem>>, vector<1x64xf32>,
    %cst_15 = arith.constant dense<0.000000e+00> : vector<8x256xf32>
    %57 = tpu.matmul %52, %2, %cst_15 {dimension_numbers = #tpu.dot_dimension_numbers<[1], [0], [0], [1], [0, 0, 1, 1], [], []>} : vector<8x64xf32>, vector<64x256xf32>, vector<8x256xf32> -> vector<8x256xf32>
    %58 = arith.addf %12, %57 : vector<8x256xf32>
    %59 = vector.extract_strided_slice %58 {offsets = [0, 0], sizes = [8, 192], strides = [1, 1]} : vector<8x256xf32> to vector<8x192xf32>
    %cst_16 = arith.constant 5.000000e-01 : f32
    %60 = vector.broadcast %cst_16 : f32 to vector<8x192xf32>
    %61 = arith.mulf %60, %59 : vector<8x192xf32>
    %62 = math.tanh %61 : vector<8x192xf32>
    %cst_17 = arith.constant 5.000000e-01 : f32
    %63 = vector.broadcast %cst_17 : f32 to vector<8x192xf32>
    %64 = arith.mulf %63, %62 : vector<8x192xf32>
    %cst_18 = arith.constant 5.000000e-01 : f32
    %65 = vector.broadcast %cst_18 : f32 to vector<8x192xf32>
    %66 = arith.addf %64, %65 : vector<8x192xf32>
    %67 = vector.extract_strided_slice %66 {offsets = [0, 0], sizes = [8, 64], strides = [1, 1]} : vector<8x192xf32> to vector<8x64xf32>
    %68 = vector.extract_strided_slice %66 {offsets = [0, 64], sizes = [8, 64], strides = [1, 1]} : vector<8x192xf32> to vector<8x64xf32>
    %69 = vector.extract_strided_slice %66 {offsets = [0, 128], sizes = [8, 64], strides = [1, 1]} : vector<8x192xf32> to vector<8x64xf32>
    %70 = vector.extract_strided_slice %58 {offsets = [0, 192], sizes = [8, 64], strides = [1, 1]} : vector<8x256xf32> to vector<8x64xf32>
    %71 = math.tanh %70 : vector<8x64xf32>
    %72 = arith.mulf %68, %50 : vector<8x64xf32>
    %73 = arith.mulf %67, %71 : vector<8x64xf32>
    %74 = arith.addf %72, %73 : vector<8x64xf32>
    %75 = math.tanh %74 : vector<8x64xf32>
    %76 = arith.mulf %69, %75 : vector<8x64xf32>
    %77 = vector.extract_strided_slice %76 {offsets = [0, 0], sizes = [1, 64], strides = [1, 1]} : vector<8x64xf32> to vector<1x64xf32>
    %c1 = arith.constant 1 : index
    %c0_19 = arith.constant 0 : index
    %78 = vector.load %arg10[%c1, %c0_19] : memref<8x128xf32, #tpu.memory_space<vmem>>, vector<1x64xf32>
    tpu.vector_store %arg10[%c1, %c0_19], %77 {strides = array<i32>} : memref<8x128xf32, #tpu.memory_space<vmem>>, vector<1x64xf32>,
    %79 = vector.extract_strided_slice %76 {offsets = [0, 0], sizes = [1, 64], strides = [1, 1]} : vector<8x64xf32> to vector<1x64xf32>
    %c6 = arith.constant 6 : index
    %c64_20 = arith.constant 64 : index
    %80 = vector.load %arg10[%c6, %c64_20] : memref<8x128xf32, #tpu.memory_space<vmem>>, vector<1x64xf32>
    tpu.vector_store %arg10[%c6, %c64_20], %79 {strides = array<i32>} : memref<8x128xf32, #tpu.memory_space<vmem>>, vector<1x64xf32>,
    %cst_21 = arith.constant dense<0.000000e+00> : vector<8x256xf32>
    %81 = tpu.matmul %76, %2, %cst_21 {dimension_numbers = #tpu.dot_dimension_numbers<[1], [0], [0], [1], [0, 0, 1, 1], [], []>} : vector<8x64xf32>, vector<64x256xf32>, vector<8x256xf32> -> vector<8x256xf32>
    %82 = arith.addf %15, %81 : vector<8x256xf32>
    %83 = vector.extract_strided_slice %82 {offsets = [0, 0], sizes = [8, 192], strides = [1, 1]} : vector<8x256xf32> to vector<8x192xf32>
    %cst_22 = arith.constant 5.000000e-01 : f32
    %84 = vector.broadcast %cst_22 : f32 to vector<8x192xf32>
    %85 = arith.mulf %84, %83 : vector<8x192xf32>
    %86 = math.tanh %85 : vector<8x192xf32>
    %cst_23 = arith.constant 5.000000e-01 : f32
    %87 = vector.broadcast %cst_23 : f32 to vector<8x192xf32>
    %88 = arith.mulf %87, %86 : vector<8x192xf32>
    %cst_24 = arith.constant 5.000000e-01 : f32
    %89 = vector.broadcast %cst_24 : f32 to vector<8x192xf32>
    %90 = arith.addf %88, %89 : vector<8x192xf32>
    %91 = vector.extract_strided_slice %90 {offsets = [0, 0], sizes = [8, 64], strides = [1, 1]} : vector<8x192xf32> to vector<8x64xf32>
    %92 = vector.extract_strided_slice %90 {offsets = [0, 64], sizes = [8, 64], strides = [1, 1]} : vector<8x192xf32> to vector<8x64xf32>
    %93 = vector.extract_strided_slice %90 {offsets = [0, 128], sizes = [8, 64], strides = [1, 1]} : vector<8x192xf32> to vector<8x64xf32>
    %94 = vector.extract_strided_slice %82 {offsets = [0, 192], sizes = [8, 64], strides = [1, 1]} : vector<8x256xf32> to vector<8x64xf32>
    %95 = math.tanh %94 : vector<8x64xf32>
    %96 = arith.mulf %92, %74 : vector<8x64xf32>
    %97 = arith.mulf %91, %95 : vector<8x64xf32>
    %98 = arith.addf %96, %97 : vector<8x64xf32>
    %99 = math.tanh %98 : vector<8x64xf32>
    %100 = arith.mulf %93, %99 : vector<8x64xf32>
    %101 = vector.extract_strided_slice %100 {offsets = [0, 0], sizes = [1, 64], strides = [1, 1]} : vector<8x64xf32> to vector<1x64xf32>
    %c2 = arith.constant 2 : index
    %c0_25 = arith.constant 0 : index
    %102 = vector.load %arg10[%c2, %c0_25] : memref<8x128xf32, #tpu.memory_space<vmem>>, vector<1x64xf32>
    tpu.vector_store %arg10[%c2, %c0_25], %101 {strides = array<i32>} : memref<8x128xf32, #tpu.memory_space<vmem>>, vector<1x64xf32>,
    %103 = vector.extract_strided_slice %100 {offsets = [0, 0], sizes = [1, 64], strides = [1, 1]} : vector<8x64xf32> to vector<1x64xf32>
    %c5 = arith.constant 5 : index
    %c64_26 = arith.constant 64 : index
    %104 = vector.load %arg10[%c5, %c64_26] : memref<8x128xf32, #tpu.memory_space<vmem>>, vector<1x64xf32>
    tpu.vector_store %arg10[%c5, %c64_26], %103 {strides = array<i32>} : memref<8x128xf32, #tpu.memory_space<vmem>>, vector<1x64xf32>,
    %cst_27 = arith.constant dense<0.000000e+00> : vector<8x256xf32>
    %105 = tpu.matmul %100, %2, %cst_27 {dimension_numbers = #tpu.dot_dimension_numbers<[1], [0], [0], [1], [0, 0, 1, 1], [], []>} : vector<8x64xf32>, vector<64x256xf32>, vector<8x256xf32> -> vector<8x256xf32>
    %106 = arith.addf %18, %105 : vector<8x256xf32>
    %107 = vector.extract_strided_slice %106 {offsets = [0, 0], sizes = [8, 192], strides = [1, 1]} : vector<8x256xf32> to vector<8x192xf32>
    %cst_28 = arith.constant 5.000000e-01 : f32
    %108 = vector.broadcast %cst_28 : f32 to vector<8x192xf32>
    %109 = arith.mulf %108, %107 : vector<8x192xf32>
    %110 = math.tanh %109 : vector<8x192xf32>
    %cst_29 = arith.constant 5.000000e-01 : f32
    %111 = vector.broadcast %cst_29 : f32 to vector<8x192xf32>
    %112 = arith.mulf %111, %110 : vector<8x192xf32>
    %cst_30 = arith.constant 5.000000e-01 : f32
    %113 = vector.broadcast %cst_30 : f32 to vector<8x192xf32>
    %114 = arith.addf %112, %113 : vector<8x192xf32>
    %115 = vector.extract_strided_slice %114 {offsets = [0, 0], sizes = [8, 64], strides = [1, 1]} : vector<8x192xf32> to vector<8x64xf32>
    %116 = vector.extract_strided_slice %114 {offsets = [0, 64], sizes = [8, 64], strides = [1, 1]} : vector<8x192xf32> to vector<8x64xf32>
    %117 = vector.extract_strided_slice %114 {offsets = [0, 128], sizes = [8, 64], strides = [1, 1]} : vector<8x192xf32> to vector<8x64xf32>
    %118 = vector.extract_strided_slice %106 {offsets = [0, 192], sizes = [8, 64], strides = [1, 1]} : vector<8x256xf32> to vector<8x64xf32>
    %119 = math.tanh %118 : vector<8x64xf32>
    %120 = arith.mulf %116, %98 : vector<8x64xf32>
    %121 = arith.mulf %115, %119 : vector<8x64xf32>
    %122 = arith.addf %120, %121 : vector<8x64xf32>
    %123 = math.tanh %122 : vector<8x64xf32>
    %124 = arith.mulf %117, %123 : vector<8x64xf32>
    %125 = vector.extract_strided_slice %124 {offsets = [0, 0], sizes = [1, 64], strides = [1, 1]} : vector<8x64xf32> to vector<1x64xf32>
    %c3 = arith.constant 3 : index
    %c0_31 = arith.constant 0 : index
    %126 = vector.load %arg10[%c3, %c0_31] : memref<8x128xf32, #tpu.memory_space<vmem>>, vector<1x64xf32>
    tpu.vector_store %arg10[%c3, %c0_31], %125 {strides = array<i32>} : memref<8x128xf32, #tpu.memory_space<vmem>>, vector<1x64xf32>,
    %127 = vector.extract_strided_slice %124 {offsets = [0, 0], sizes = [1, 64], strides = [1, 1]} : vector<8x64xf32> to vector<1x64xf32>
    %c4 = arith.constant 4 : index
    %c64_32 = arith.constant 64 : index
    %128 = vector.load %arg10[%c4, %c64_32] : memref<8x128xf32, #tpu.memory_space<vmem>>, vector<1x64xf32>
    tpu.vector_store %arg10[%c4, %c64_32], %127 {strides = array<i32>} : memref<8x128xf32, #tpu.memory_space<vmem>>, vector<1x64xf32>,
    %cst_33 = arith.constant dense<0.000000e+00> : vector<8x256xf32>
    %129 = tpu.matmul %124, %2, %cst_33 {dimension_numbers = #tpu.dot_dimension_numbers<[1], [0], [0], [1], [0, 0, 1, 1], [], []>} : vector<8x64xf32>, vector<64x256xf32>, vector<8x256xf32> -> vector<8x256xf32>
    %130 = arith.addf %21, %129 : vector<8x256xf32>
    %131 = vector.extract_strided_slice %130 {offsets = [0, 0], sizes = [8, 192], strides = [1, 1]} : vector<8x256xf32> to vector<8x192xf32>
    %cst_34 = arith.constant 5.000000e-01 : f32
    %132 = vector.broadcast %cst_34 : f32 to vector<8x192xf32>
    %133 = arith.mulf %132, %131 : vector<8x192xf32>
    %134 = math.tanh %133 : vector<8x192xf32>
    %cst_35 = arith.constant 5.000000e-01 : f32
    %135 = vector.broadcast %cst_35 : f32 to vector<8x192xf32>
    %136 = arith.mulf %135, %134 : vector<8x192xf32>
    %cst_36 = arith.constant 5.000000e-01 : f32
    %137 = vector.broadcast %cst_36 : f32 to vector<8x192xf32>
    %138 = arith.addf %136, %137 : vector<8x192xf32>
    %139 = vector.extract_strided_slice %138 {offsets = [0, 0], sizes = [8, 64], strides = [1, 1]} : vector<8x192xf32> to vector<8x64xf32>
    %140 = vector.extract_strided_slice %138 {offsets = [0, 64], sizes = [8, 64], strides = [1, 1]} : vector<8x192xf32> to vector<8x64xf32>
    %141 = vector.extract_strided_slice %138 {offsets = [0, 128], sizes = [8, 64], strides = [1, 1]} : vector<8x192xf32> to vector<8x64xf32>
    %142 = vector.extract_strided_slice %130 {offsets = [0, 192], sizes = [8, 64], strides = [1, 1]} : vector<8x256xf32> to vector<8x64xf32>
    %143 = math.tanh %142 : vector<8x64xf32>
    %144 = arith.mulf %140, %122 : vector<8x64xf32>
    %145 = arith.mulf %139, %143 : vector<8x64xf32>
    %146 = arith.addf %144, %145 : vector<8x64xf32>
    %147 = math.tanh %146 : vector<8x64xf32>
    %148 = arith.mulf %141, %147 : vector<8x64xf32>
    %149 = vector.extract_strided_slice %148 {offsets = [0, 0], sizes = [1, 64], strides = [1, 1]} : vector<8x64xf32> to vector<1x64xf32>
    %c4_37 = arith.constant 4 : index
    %c0_38 = arith.constant 0 : index
    %150 = vector.load %arg10[%c4_37, %c0_38] : memref<8x128xf32, #tpu.memory_space<vmem>>, vector<1x64xf32>
    tpu.vector_store %arg10[%c4_37, %c0_38], %149 {strides = array<i32>} : memref<8x128xf32, #tpu.memory_space<vmem>>, vector<1x64xf32>,
    %151 = vector.extract_strided_slice %148 {offsets = [0, 0], sizes = [1, 64], strides = [1, 1]} : vector<8x64xf32> to vector<1x64xf32>
    %c3_39 = arith.constant 3 : index
    %c64_40 = arith.constant 64 : index
    %152 = vector.load %arg10[%c3_39, %c64_40] : memref<8x128xf32, #tpu.memory_space<vmem>>, vector<1x64xf32>
    tpu.vector_store %arg10[%c3_39, %c64_40], %151 {strides = array<i32>} : memref<8x128xf32, #tpu.memory_space<vmem>>, vector<1x64xf32>,
    %cst_41 = arith.constant dense<0.000000e+00> : vector<8x256xf32>
    %153 = tpu.matmul %148, %2, %cst_41 {dimension_numbers = #tpu.dot_dimension_numbers<[1], [0], [0], [1], [0, 0, 1, 1], [], []>} : vector<8x64xf32>, vector<64x256xf32>, vector<8x256xf32> -> vector<8x256xf32>
    %154 = arith.addf %24, %153 : vector<8x256xf32>
    %155 = vector.extract_strided_slice %154 {offsets = [0, 0], sizes = [8, 192], strides = [1, 1]} : vector<8x256xf32> to vector<8x192xf32>
    %cst_42 = arith.constant 5.000000e-01 : f32
    %156 = vector.broadcast %cst_42 : f32 to vector<8x192xf32>
    %157 = arith.mulf %156, %155 : vector<8x192xf32>
    %158 = math.tanh %157 : vector<8x192xf32>
    %cst_43 = arith.constant 5.000000e-01 : f32
    %159 = vector.broadcast %cst_43 : f32 to vector<8x192xf32>
    %160 = arith.mulf %159, %158 : vector<8x192xf32>
    %cst_44 = arith.constant 5.000000e-01 : f32
    %161 = vector.broadcast %cst_44 : f32 to vector<8x192xf32>
    %162 = arith.addf %160, %161 : vector<8x192xf32>
    %163 = vector.extract_strided_slice %162 {offsets = [0, 0], sizes = [8, 64], strides = [1, 1]} : vector<8x192xf32> to vector<8x64xf32>
    %164 = vector.extract_strided_slice %162 {offsets = [0, 64], sizes = [8, 64], strides = [1, 1]} : vector<8x192xf32> to vector<8x64xf32>
    %165 = vector.extract_strided_slice %162 {offsets = [0, 128], sizes = [8, 64], strides = [1, 1]} : vector<8x192xf32> to vector<8x64xf32>
    %166 = vector.extract_strided_slice %154 {offsets = [0, 192], sizes = [8, 64], strides = [1, 1]} : vector<8x256xf32> to vector<8x64xf32>
    %167 = math.tanh %166 : vector<8x64xf32>
    %168 = arith.mulf %164, %146 : vector<8x64xf32>
    %169 = arith.mulf %163, %167 : vector<8x64xf32>
    %170 = arith.addf %168, %169 : vector<8x64xf32>
    %171 = math.tanh %170 : vector<8x64xf32>
    %172 = arith.mulf %165, %171 : vector<8x64xf32>
    %173 = vector.extract_strided_slice %172 {offsets = [0, 0], sizes = [1, 64], strides = [1, 1]} : vector<8x64xf32> to vector<1x64xf32>
    %c5_45 = arith.constant 5 : index
    %c0_46 = arith.constant 0 : index
    %174 = vector.load %arg10[%c5_45, %c0_46] : memref<8x128xf32, #tpu.memory_space<vmem>>, vector<1x64xf32>
    tpu.vector_store %arg10[%c5_45, %c0_46], %173 {strides = array<i32>} : memref<8x128xf32, #tpu.memory_space<vmem>>, vector<1x64xf32>,
    %175 = vector.extract_strided_slice %172 {offsets = [0, 0], sizes = [1, 64], strides = [1, 1]} : vector<8x64xf32> to vector<1x64xf32>
    %c2_47 = arith.constant 2 : index
    %c64_48 = arith.constant 64 : index
    %176 = vector.load %arg10[%c2_47, %c64_48] : memref<8x128xf32, #tpu.memory_space<vmem>>, vector<1x64xf32>
    tpu.vector_store %arg10[%c2_47, %c64_48], %175 {strides = array<i32>} : memref<8x128xf32, #tpu.memory_space<vmem>>, vector<1x64xf32>,
    %cst_49 = arith.constant dense<0.000000e+00> : vector<8x256xf32>
    %177 = tpu.matmul %172, %2, %cst_49 {dimension_numbers = #tpu.dot_dimension_numbers<[1], [0], [0], [1], [0, 0, 1, 1], [], []>} : vector<8x64xf32>, vector<64x256xf32>, vector<8x256xf32> -> vector<8x256xf32>
    %178 = arith.addf %27, %177 : vector<8x256xf32>
    %179 = vector.extract_strided_slice %178 {offsets = [0, 0], sizes = [8, 192], strides = [1, 1]} : vector<8x256xf32> to vector<8x192xf32>
    %cst_50 = arith.constant 5.000000e-01 : f32
    %180 = vector.broadcast %cst_50 : f32 to vector<8x192xf32>
    %181 = arith.mulf %180, %179 : vector<8x192xf32>
    %182 = math.tanh %181 : vector<8x192xf32>
    %cst_51 = arith.constant 5.000000e-01 : f32
    %183 = vector.broadcast %cst_51 : f32 to vector<8x192xf32>
    %184 = arith.mulf %183, %182 : vector<8x192xf32>
    %cst_52 = arith.constant 5.000000e-01 : f32
    %185 = vector.broadcast %cst_52 : f32 to vector<8x192xf32>
    %186 = arith.addf %184, %185 : vector<8x192xf32>
    %187 = vector.extract_strided_slice %186 {offsets = [0, 0], sizes = [8, 64], strides = [1, 1]} : vector<8x192xf32> to vector<8x64xf32>
    %188 = vector.extract_strided_slice %186 {offsets = [0, 64], sizes = [8, 64], strides = [1, 1]} : vector<8x192xf32> to vector<8x64xf32>
    %189 = vector.extract_strided_slice %186 {offsets = [0, 128], sizes = [8, 64], strides = [1, 1]} : vector<8x192xf32> to vector<8x64xf32>
    %190 = vector.extract_strided_slice %178 {offsets = [0, 192], sizes = [8, 64], strides = [1, 1]} : vector<8x256xf32> to vector<8x64xf32>
    %191 = math.tanh %190 : vector<8x64xf32>
    %192 = arith.mulf %188, %170 : vector<8x64xf32>
    %193 = arith.mulf %187, %191 : vector<8x64xf32>
    %194 = arith.addf %192, %193 : vector<8x64xf32>
    %195 = math.tanh %194 : vector<8x64xf32>
    %196 = arith.mulf %189, %195 : vector<8x64xf32>
    %197 = vector.extract_strided_slice %196 {offsets = [0, 0], sizes = [1, 64], strides = [1, 1]} : vector<8x64xf32> to vector<1x64xf32>
    %c6_53 = arith.constant 6 : index
    %c0_54 = arith.constant 0 : index
    %198 = vector.load %arg10[%c6_53, %c0_54] : memref<8x128xf32, #tpu.memory_space<vmem>>, vector<1x64xf32>
    tpu.vector_store %arg10[%c6_53, %c0_54], %197 {strides = array<i32>} : memref<8x128xf32, #tpu.memory_space<vmem>>, vector<1x64xf32>,
    %199 = vector.extract_strided_slice %196 {offsets = [0, 0], sizes = [1, 64], strides = [1, 1]} : vector<8x64xf32> to vector<1x64xf32>
    %c1_55 = arith.constant 1 : index
    %c64_56 = arith.constant 64 : index
    %200 = vector.load %arg10[%c1_55, %c64_56] : memref<8x128xf32, #tpu.memory_space<vmem>>, vector<1x64xf32>
    tpu.vector_store %arg10[%c1_55, %c64_56], %199 {strides = array<i32>} : memref<8x128xf32, #tpu.memory_space<vmem>>, vector<1x64xf32>,
    %cst_57 = arith.constant dense<0.000000e+00> : vector<8x256xf32>
    %201 = tpu.matmul %196, %2, %cst_57 {dimension_numbers = #tpu.dot_dimension_numbers<[1], [0], [0], [1], [0, 0, 1, 1], [], []>} : vector<8x64xf32>, vector<64x256xf32>, vector<8x256xf32> -> vector<8x256xf32>
    %202 = arith.addf %30, %201 : vector<8x256xf32>
    %203 = vector.extract_strided_slice %202 {offsets = [0, 0], sizes = [8, 192], strides = [1, 1]} : vector<8x256xf32> to vector<8x192xf32>
    %cst_58 = arith.constant 5.000000e-01 : f32
    %204 = vector.broadcast %cst_58 : f32 to vector<8x192xf32>
    %205 = arith.mulf %204, %203 : vector<8x192xf32>
    %206 = math.tanh %205 : vector<8x192xf32>
    %cst_59 = arith.constant 5.000000e-01 : f32
    %207 = vector.broadcast %cst_59 : f32 to vector<8x192xf32>
    %208 = arith.mulf %207, %206 : vector<8x192xf32>
    %cst_60 = arith.constant 5.000000e-01 : f32
    %209 = vector.broadcast %cst_60 : f32 to vector<8x192xf32>
    %210 = arith.addf %208, %209 : vector<8x192xf32>
    %211 = vector.extract_strided_slice %210 {offsets = [0, 0], sizes = [8, 64], strides = [1, 1]} : vector<8x192xf32> to vector<8x64xf32>
    %212 = vector.extract_strided_slice %210 {offsets = [0, 64], sizes = [8, 64], strides = [1, 1]} : vector<8x192xf32> to vector<8x64xf32>
    %213 = vector.extract_strided_slice %210 {offsets = [0, 128], sizes = [8, 64], strides = [1, 1]} : vector<8x192xf32> to vector<8x64xf32>
    %214 = vector.extract_strided_slice %202 {offsets = [0, 192], sizes = [8, 64], strides = [1, 1]} : vector<8x256xf32> to vector<8x64xf32>
    %215 = math.tanh %214 : vector<8x64xf32>
    %216 = arith.mulf %212, %194 : vector<8x64xf32>
    %217 = arith.mulf %211, %215 : vector<8x64xf32>
    %218 = arith.addf %216, %217 : vector<8x64xf32>
    %219 = math.tanh %218 : vector<8x64xf32>
    %220 = arith.mulf %213, %219 : vector<8x64xf32>
    %221 = vector.extract_strided_slice %220 {offsets = [0, 0], sizes = [1, 64], strides = [1, 1]} : vector<8x64xf32> to vector<1x64xf32>
    %c7_61 = arith.constant 7 : index
    %c0_62 = arith.constant 0 : index
    %222 = vector.load %arg10[%c7_61, %c0_62] : memref<8x128xf32, #tpu.memory_space<vmem>>, vector<1x64xf32>
    tpu.vector_store %arg10[%c7_61, %c0_62], %221 {strides = array<i32>} : memref<8x128xf32, #tpu.memory_space<vmem>>, vector<1x64xf32>,
    %223 = vector.extract_strided_slice %220 {offsets = [0, 0], sizes = [1, 64], strides = [1, 1]} : vector<8x64xf32> to vector<1x64xf32>
    %c0_63 = arith.constant 0 : index
    %c64_64 = arith.constant 64 : index
    %224 = vector.load %arg10[%c0_63, %c64_64] : memref<8x128xf32, #tpu.memory_space<vmem>>, vector<1x64xf32>
    tpu.vector_store %arg10[%c0_63, %c64_64], %223 {strides = array<i32>} : memref<8x128xf32, #tpu.memory_space<vmem>>, vector<1x64xf32>,
    %c0_65 = arith.constant 0 : index
    %c0_66 = arith.constant 0 : index
    %225 = vector.load %arg10[%c0_65, %c0_66] : memref<8x128xf32, #tpu.memory_space<vmem>>, vector<8x128xf32>
    %c0_67 = arith.constant 0 : index
    %c0_68 = arith.constant 0 : index
    %226 = vector.load %arg4[%c0_67, %c0_68] : memref<128x256xf32, #tpu.memory_space<vmem>>, vector<128x256xf32>
    %c0_69 = arith.constant 0 : index
    %c0_70 = arith.constant 0 : index
    %227 = vector.load %arg5[%c0_69, %c0_70] : memref<64x256xf32, #tpu.memory_space<vmem>>, vector<64x256xf32>
    %c0_71 = arith.constant 0 : index
    %c0_72 = arith.constant 0 : index
    %228 = vector.load %arg6[%c0_71, %c0_72] : memref<1x256xf32, #tpu.memory_space<vmem>>, vector<1x256xf32>
    %cst_73 = arith.constant dense<0.000000e+00> : vector<8x256xf32>
    %229 = tpu.matmul %225, %226, %cst_73 {dimension_numbers = #tpu.dot_dimension_numbers<[1], [0], [0], [1], [0, 0, 1, 1], [], []>} : vector<8x128xf32>, vector<128x256xf32>, vector<8x256xf32> -> vector<8x256xf32>
    %230 = vector.broadcast %228 : vector<1x256xf32> to vector<8x256xf32>
    %231 = arith.addf %229, %230 : vector<8x256xf32>
    %232 = vector.extract_strided_slice %231 {offsets = [0, 0], sizes = [1, 256], strides = [1, 1]} : vector<8x256xf32> to vector<1x256xf32>
    %233 = vector.shape_cast %232 : vector<1x256xf32> to vector<1x256xf32>
    %234 = vector.broadcast %233 : vector<1x256xf32> to vector<8x256xf32>
    %235 = vector.extract_strided_slice %231 {offsets = [1, 0], sizes = [1, 256], strides = [1, 1]} : vector<8x256xf32> to vector<1x256xf32>
    %236 = vector.shape_cast %235 : vector<1x256xf32> to vector<1x256xf32>
    %237 = vector.broadcast %236 : vector<1x256xf32> to vector<8x256xf32>
    %238 = vector.extract_strided_slice %231 {offsets = [2, 0], sizes = [1, 256], strides = [1, 1]} : vector<8x256xf32> to vector<1x256xf32>
    %239 = vector.shape_cast %238 : vector<1x256xf32> to vector<1x256xf32>
    %240 = vector.broadcast %239 : vector<1x256xf32> to vector<8x256xf32>
    %241 = vector.extract_strided_slice %231 {offsets = [3, 0], sizes = [1, 256], strides = [1, 1]} : vector<8x256xf32> to vector<1x256xf32>
    %242 = vector.shape_cast %241 : vector<1x256xf32> to vector<1x256xf32>
    %243 = vector.broadcast %242 : vector<1x256xf32> to vector<8x256xf32>
    %244 = vector.extract_strided_slice %231 {offsets = [4, 0], sizes = [1, 256], strides = [1, 1]} : vector<8x256xf32> to vector<1x256xf32>
    %245 = vector.shape_cast %244 : vector<1x256xf32> to vector<1x256xf32>
    %246 = vector.broadcast %245 : vector<1x256xf32> to vector<8x256xf32>
    %247 = vector.extract_strided_slice %231 {offsets = [5, 0], sizes = [1, 256], strides = [1, 1]} : vector<8x256xf32> to vector<1x256xf32>
    %248 = vector.shape_cast %247 : vector<1x256xf32> to vector<1x256xf32>
    %249 = vector.broadcast %248 : vector<1x256xf32> to vector<8x256xf32>
    %250 = vector.extract_strided_slice %231 {offsets = [6, 0], sizes = [1, 256], strides = [1, 1]} : vector<8x256xf32> to vector<1x256xf32>
    %251 = vector.shape_cast %250 : vector<1x256xf32> to vector<1x256xf32>
    %252 = vector.broadcast %251 : vector<1x256xf32> to vector<8x256xf32>
    %253 = vector.extract_strided_slice %231 {offsets = [7, 0], sizes = [1, 256], strides = [1, 1]} : vector<8x256xf32> to vector<1x256xf32>
    %254 = vector.shape_cast %253 : vector<1x256xf32> to vector<1x256xf32>
    %255 = vector.broadcast %254 : vector<1x256xf32> to vector<8x256xf32>
    %cst_74 = arith.constant 0.000000e+00 : f32
    %256 = vector.broadcast %cst_74 : f32 to vector<8x64xf32>
    %cst_75 = arith.constant 0.000000e+00 : f32
    %257 = vector.broadcast %cst_75 : f32 to vector<8x64xf32>
    %cst_76 = arith.constant dense<0.000000e+00> : vector<8x256xf32>
    %258 = tpu.matmul %256, %227, %cst_76 {dimension_numbers = #tpu.dot_dimension_numbers<[1], [0], [0], [1], [0, 0, 1, 1], [], []>} : vector<8x64xf32>, vector<64x256xf32>, vector<8x256xf32> -> vector<8x256xf32>
    %259 = arith.addf %234, %258 : vector<8x256xf32>
    %260 = vector.extract_strided_slice %259 {offsets = [0, 0], sizes = [8, 192], strides = [1, 1]} : vector<8x256xf32> to vector<8x192xf32>
    %cst_77 = arith.constant 5.000000e-01 : f32
    %261 = vector.broadcast %cst_77 : f32 to vector<8x192xf32>
    %262 = arith.mulf %261, %260 : vector<8x192xf32>
    %263 = math.tanh %262 : vector<8x192xf32>
    %cst_78 = arith.constant 5.000000e-01 : f32
    %264 = vector.broadcast %cst_78 : f32 to vector<8x192xf32>
    %265 = arith.mulf %264, %263 : vector<8x192xf32>
    %cst_79 = arith.constant 5.000000e-01 : f32
    %266 = vector.broadcast %cst_79 : f32 to vector<8x192xf32>
    %267 = arith.addf %265, %266 : vector<8x192xf32>
    %268 = vector.extract_strided_slice %267 {offsets = [0, 0], sizes = [8, 64], strides = [1, 1]} : vector<8x192xf32> to vector<8x64xf32>
    %269 = vector.extract_strided_slice %267 {offsets = [0, 64], sizes = [8, 64], strides = [1, 1]} : vector<8x192xf32> to vector<8x64xf32>
    %270 = vector.extract_strided_slice %267 {offsets = [0, 128], sizes = [8, 64], strides = [1, 1]} : vector<8x192xf32> to vector<8x64xf32>
    %271 = vector.extract_strided_slice %259 {offsets = [0, 192], sizes = [8, 64], strides = [1, 1]} : vector<8x256xf32> to vector<8x64xf32>
    %272 = math.tanh %271 : vector<8x64xf32>
    %273 = arith.mulf %269, %257 : vector<8x64xf32>
    %274 = arith.mulf %268, %272 : vector<8x64xf32>
    %275 = arith.addf %273, %274 : vector<8x64xf32>
    %276 = math.tanh %275 : vector<8x64xf32>
    %277 = arith.mulf %270, %276 : vector<8x64xf32>
    %278 = vector.extract_strided_slice %277 {offsets = [0, 0], sizes = [1, 64], strides = [1, 1]} : vector<8x64xf32> to vector<1x64xf32>
    %c0_80 = arith.constant 0 : index
    %c0_81 = arith.constant 0 : index
    %279 = vector.load %arg11[%c0_80, %c0_81] : memref<8x128xf32, #tpu.memory_space<vmem>>, vector<1x64xf32>
    tpu.vector_store %arg11[%c0_80, %c0_81], %278 {strides = array<i32>} : memref<8x128xf32, #tpu.memory_space<vmem>>, vector<1x64xf32>,
    %280 = vector.extract_strided_slice %277 {offsets = [0, 0], sizes = [1, 64], strides = [1, 1]} : vector<8x64xf32> to vector<1x64xf32>
    %c7_82 = arith.constant 7 : index
    %c64_83 = arith.constant 64 : index
    %281 = vector.load %arg11[%c7_82, %c64_83] : memref<8x128xf32, #tpu.memory_space<vmem>>, vector<1x64xf32>
    tpu.vector_store %arg11[%c7_82, %c64_83], %280 {strides = array<i32>} : memref<8x128xf32, #tpu.memory_space<vmem>>, vector<1x64xf32>,
    %cst_84 = arith.constant dense<0.000000e+00> : vector<8x256xf32>
    %282 = tpu.matmul %277, %227, %cst_84 {dimension_numbers = #tpu.dot_dimension_numbers<[1], [0], [0], [1], [0, 0, 1, 1], [], []>} : vector<8x64xf32>, vector<64x256xf32>, vector<8x256xf32> -> vector<8x256xf32>
    %283 = arith.addf %237, %282 : vector<8x256xf32>
    %284 = vector.extract_strided_slice %283 {offsets = [0, 0], sizes = [8, 192], strides = [1, 1]} : vector<8x256xf32> to vector<8x192xf32>
    %cst_85 = arith.constant 5.000000e-01 : f32
    %285 = vector.broadcast %cst_85 : f32 to vector<8x192xf32>
    %286 = arith.mulf %285, %284 : vector<8x192xf32>
    %287 = math.tanh %286 : vector<8x192xf32>
    %cst_86 = arith.constant 5.000000e-01 : f32
    %288 = vector.broadcast %cst_86 : f32 to vector<8x192xf32>
    %289 = arith.mulf %288, %287 : vector<8x192xf32>
    %cst_87 = arith.constant 5.000000e-01 : f32
    %290 = vector.broadcast %cst_87 : f32 to vector<8x192xf32>
    %291 = arith.addf %289, %290 : vector<8x192xf32>
    %292 = vector.extract_strided_slice %291 {offsets = [0, 0], sizes = [8, 64], strides = [1, 1]} : vector<8x192xf32> to vector<8x64xf32>
    %293 = vector.extract_strided_slice %291 {offsets = [0, 64], sizes = [8, 64], strides = [1, 1]} : vector<8x192xf32> to vector<8x64xf32>
    %294 = vector.extract_strided_slice %291 {offsets = [0, 128], sizes = [8, 64], strides = [1, 1]} : vector<8x192xf32> to vector<8x64xf32>
    %295 = vector.extract_strided_slice %283 {offsets = [0, 192], sizes = [8, 64], strides = [1, 1]} : vector<8x256xf32> to vector<8x64xf32>
    %296 = math.tanh %295 : vector<8x64xf32>
    %297 = arith.mulf %293, %275 : vector<8x64xf32>
    %298 = arith.mulf %292, %296 : vector<8x64xf32>
    %299 = arith.addf %297, %298 : vector<8x64xf32>
    %300 = math.tanh %299 : vector<8x64xf32>
    %301 = arith.mulf %294, %300 : vector<8x64xf32>
    %302 = vector.extract_strided_slice %301 {offsets = [0, 0], sizes = [1, 64], strides = [1, 1]} : vector<8x64xf32> to vector<1x64xf32>
    %c1_88 = arith.constant 1 : index
    %c0_89 = arith.constant 0 : index
    %303 = vector.load %arg11[%c1_88, %c0_89] : memref<8x128xf32, #tpu.memory_space<vmem>>, vector<1x64xf32>
    tpu.vector_store %arg11[%c1_88, %c0_89], %302 {strides = array<i32>} : memref<8x128xf32, #tpu.memory_space<vmem>>, vector<1x64xf32>,
    %304 = vector.extract_strided_slice %301 {offsets = [0, 0], sizes = [1, 64], strides = [1, 1]} : vector<8x64xf32> to vector<1x64xf32>
    %c6_90 = arith.constant 6 : index
    %c64_91 = arith.constant 64 : index
    %305 = vector.load %arg11[%c6_90, %c64_91] : memref<8x128xf32, #tpu.memory_space<vmem>>, vector<1x64xf32>
    tpu.vector_store %arg11[%c6_90, %c64_91], %304 {strides = array<i32>} : memref<8x128xf32, #tpu.memory_space<vmem>>, vector<1x64xf32>,
    %cst_92 = arith.constant dense<0.000000e+00> : vector<8x256xf32>
    %306 = tpu.matmul %301, %227, %cst_92 {dimension_numbers = #tpu.dot_dimension_numbers<[1], [0], [0], [1], [0, 0, 1, 1], [], []>} : vector<8x64xf32>, vector<64x256xf32>, vector<8x256xf32> -> vector<8x256xf32>
    %307 = arith.addf %240, %306 : vector<8x256xf32>
    %308 = vector.extract_strided_slice %307 {offsets = [0, 0], sizes = [8, 192], strides = [1, 1]} : vector<8x256xf32> to vector<8x192xf32>
    %cst_93 = arith.constant 5.000000e-01 : f32
    %309 = vector.broadcast %cst_93 : f32 to vector<8x192xf32>
    %310 = arith.mulf %309, %308 : vector<8x192xf32>
    %311 = math.tanh %310 : vector<8x192xf32>
    %cst_94 = arith.constant 5.000000e-01 : f32
    %312 = vector.broadcast %cst_94 : f32 to vector<8x192xf32>
    %313 = arith.mulf %312, %311 : vector<8x192xf32>
    %cst_95 = arith.constant 5.000000e-01 : f32
    %314 = vector.broadcast %cst_95 : f32 to vector<8x192xf32>
    %315 = arith.addf %313, %314 : vector<8x192xf32>
    %316 = vector.extract_strided_slice %315 {offsets = [0, 0], sizes = [8, 64], strides = [1, 1]} : vector<8x192xf32> to vector<8x64xf32>
    %317 = vector.extract_strided_slice %315 {offsets = [0, 64], sizes = [8, 64], strides = [1, 1]} : vector<8x192xf32> to vector<8x64xf32>
    %318 = vector.extract_strided_slice %315 {offsets = [0, 128], sizes = [8, 64], strides = [1, 1]} : vector<8x192xf32> to vector<8x64xf32>
    %319 = vector.extract_strided_slice %307 {offsets = [0, 192], sizes = [8, 64], strides = [1, 1]} : vector<8x256xf32> to vector<8x64xf32>
    %320 = math.tanh %319 : vector<8x64xf32>
    %321 = arith.mulf %317, %299 : vector<8x64xf32>
    %322 = arith.mulf %316, %320 : vector<8x64xf32>
    %323 = arith.addf %321, %322 : vector<8x64xf32>
    %324 = math.tanh %323 : vector<8x64xf32>
    %325 = arith.mulf %318, %324 : vector<8x64xf32>
    %326 = vector.extract_strided_slice %325 {offsets = [0, 0], sizes = [1, 64], strides = [1, 1]} : vector<8x64xf32> to vector<1x64xf32>
    %c2_96 = arith.constant 2 : index
    %c0_97 = arith.constant 0 : index
    %327 = vector.load %arg11[%c2_96, %c0_97] : memref<8x128xf32, #tpu.memory_space<vmem>>, vector<1x64xf32>
    tpu.vector_store %arg11[%c2_96, %c0_97], %326 {strides = array<i32>} : memref<8x128xf32, #tpu.memory_space<vmem>>, vector<1x64xf32>,
    %328 = vector.extract_strided_slice %325 {offsets = [0, 0], sizes = [1, 64], strides = [1, 1]} : vector<8x64xf32> to vector<1x64xf32>
    %c5_98 = arith.constant 5 : index
    %c64_99 = arith.constant 64 : index
    %329 = vector.load %arg11[%c5_98, %c64_99] : memref<8x128xf32, #tpu.memory_space<vmem>>, vector<1x64xf32>
    tpu.vector_store %arg11[%c5_98, %c64_99], %328 {strides = array<i32>} : memref<8x128xf32, #tpu.memory_space<vmem>>, vector<1x64xf32>,
    %cst_100 = arith.constant dense<0.000000e+00> : vector<8x256xf32>
    %330 = tpu.matmul %325, %227, %cst_100 {dimension_numbers = #tpu.dot_dimension_numbers<[1], [0], [0], [1], [0, 0, 1, 1], [], []>} : vector<8x64xf32>, vector<64x256xf32>, vector<8x256xf32> -> vector<8x256xf32>
    %331 = arith.addf %243, %330 : vector<8x256xf32>
    %332 = vector.extract_strided_slice %331 {offsets = [0, 0], sizes = [8, 192], strides = [1, 1]} : vector<8x256xf32> to vector<8x192xf32>
    %cst_101 = arith.constant 5.000000e-01 : f32
    %333 = vector.broadcast %cst_101 : f32 to vector<8x192xf32>
    %334 = arith.mulf %333, %332 : vector<8x192xf32>
    %335 = math.tanh %334 : vector<8x192xf32>
    %cst_102 = arith.constant 5.000000e-01 : f32
    %336 = vector.broadcast %cst_102 : f32 to vector<8x192xf32>
    %337 = arith.mulf %336, %335 : vector<8x192xf32>
    %cst_103 = arith.constant 5.000000e-01 : f32
    %338 = vector.broadcast %cst_103 : f32 to vector<8x192xf32>
    %339 = arith.addf %337, %338 : vector<8x192xf32>
    %340 = vector.extract_strided_slice %339 {offsets = [0, 0], sizes = [8, 64], strides = [1, 1]} : vector<8x192xf32> to vector<8x64xf32>
    %341 = vector.extract_strided_slice %339 {offsets = [0, 64], sizes = [8, 64], strides = [1, 1]} : vector<8x192xf32> to vector<8x64xf32>
    %342 = vector.extract_strided_slice %339 {offsets = [0, 128], sizes = [8, 64], strides = [1, 1]} : vector<8x192xf32> to vector<8x64xf32>
    %343 = vector.extract_strided_slice %331 {offsets = [0, 192], sizes = [8, 64], strides = [1, 1]} : vector<8x256xf32> to vector<8x64xf32>
    %344 = math.tanh %343 : vector<8x64xf32>
    %345 = arith.mulf %341, %323 : vector<8x64xf32>
    %346 = arith.mulf %340, %344 : vector<8x64xf32>
    %347 = arith.addf %345, %346 : vector<8x64xf32>
    %348 = math.tanh %347 : vector<8x64xf32>
    %349 = arith.mulf %342, %348 : vector<8x64xf32>
    %350 = vector.extract_strided_slice %349 {offsets = [0, 0], sizes = [1, 64], strides = [1, 1]} : vector<8x64xf32> to vector<1x64xf32>
    %c3_104 = arith.constant 3 : index
    %c0_105 = arith.constant 0 : index
    %351 = vector.load %arg11[%c3_104, %c0_105] : memref<8x128xf32, #tpu.memory_space<vmem>>, vector<1x64xf32>
    tpu.vector_store %arg11[%c3_104, %c0_105], %350 {strides = array<i32>} : memref<8x128xf32, #tpu.memory_space<vmem>>, vector<1x64xf32>,
    %352 = vector.extract_strided_slice %349 {offsets = [0, 0], sizes = [1, 64], strides = [1, 1]} : vector<8x64xf32> to vector<1x64xf32>
    %c4_106 = arith.constant 4 : index
    %c64_107 = arith.constant 64 : index
    %353 = vector.load %arg11[%c4_106, %c64_107] : memref<8x128xf32, #tpu.memory_space<vmem>>, vector<1x64xf32>
    tpu.vector_store %arg11[%c4_106, %c64_107], %352 {strides = array<i32>} : memref<8x128xf32, #tpu.memory_space<vmem>>, vector<1x64xf32>,
    %cst_108 = arith.constant dense<0.000000e+00> : vector<8x256xf32>
    %354 = tpu.matmul %349, %227, %cst_108 {dimension_numbers = #tpu.dot_dimension_numbers<[1], [0], [0], [1], [0, 0, 1, 1], [], []>} : vector<8x64xf32>, vector<64x256xf32>, vector<8x256xf32> -> vector<8x256xf32>
    %355 = arith.addf %246, %354 : vector<8x256xf32>
    %356 = vector.extract_strided_slice %355 {offsets = [0, 0], sizes = [8, 192], strides = [1, 1]} : vector<8x256xf32> to vector<8x192xf32>
    %cst_109 = arith.constant 5.000000e-01 : f32
    %357 = vector.broadcast %cst_109 : f32 to vector<8x192xf32>
    %358 = arith.mulf %357, %356 : vector<8x192xf32>
    %359 = math.tanh %358 : vector<8x192xf32>
    %cst_110 = arith.constant 5.000000e-01 : f32
    %360 = vector.broadcast %cst_110 : f32 to vector<8x192xf32>
    %361 = arith.mulf %360, %359 : vector<8x192xf32>
    %cst_111 = arith.constant 5.000000e-01 : f32
    %362 = vector.broadcast %cst_111 : f32 to vector<8x192xf32>
    %363 = arith.addf %361, %362 : vector<8x192xf32>
    %364 = vector.extract_strided_slice %363 {offsets = [0, 0], sizes = [8, 64], strides = [1, 1]} : vector<8x192xf32> to vector<8x64xf32>
    %365 = vector.extract_strided_slice %363 {offsets = [0, 64], sizes = [8, 64], strides = [1, 1]} : vector<8x192xf32> to vector<8x64xf32>
    %366 = vector.extract_strided_slice %363 {offsets = [0, 128], sizes = [8, 64], strides = [1, 1]} : vector<8x192xf32> to vector<8x64xf32>
    %367 = vector.extract_strided_slice %355 {offsets = [0, 192], sizes = [8, 64], strides = [1, 1]} : vector<8x256xf32> to vector<8x64xf32>
    %368 = math.tanh %367 : vector<8x64xf32>
    %369 = arith.mulf %365, %347 : vector<8x64xf32>
    %370 = arith.mulf %364, %368 : vector<8x64xf32>
    %371 = arith.addf %369, %370 : vector<8x64xf32>
    %372 = math.tanh %371 : vector<8x64xf32>
    %373 = arith.mulf %366, %372 : vector<8x64xf32>
    %374 = vector.extract_strided_slice %373 {offsets = [0, 0], sizes = [1, 64], strides = [1, 1]} : vector<8x64xf32> to vector<1x64xf32>
    %c4_112 = arith.constant 4 : index
    %c0_113 = arith.constant 0 : index
    %375 = vector.load %arg11[%c4_112, %c0_113] : memref<8x128xf32, #tpu.memory_space<vmem>>, vector<1x64xf32>
    tpu.vector_store %arg11[%c4_112, %c0_113], %374 {strides = array<i32>} : memref<8x128xf32, #tpu.memory_space<vmem>>, vector<1x64xf32>,
    %376 = vector.extract_strided_slice %373 {offsets = [0, 0], sizes = [1, 64], strides = [1, 1]} : vector<8x64xf32> to vector<1x64xf32>
    %c3_114 = arith.constant 3 : index
    %c64_115 = arith.constant 64 : index
    %377 = vector.load %arg11[%c3_114, %c64_115] : memref<8x128xf32, #tpu.memory_space<vmem>>, vector<1x64xf32>
    tpu.vector_store %arg11[%c3_114, %c64_115], %376 {strides = array<i32>} : memref<8x128xf32, #tpu.memory_space<vmem>>, vector<1x64xf32>,
    %cst_116 = arith.constant dense<0.000000e+00> : vector<8x256xf32>
    %378 = tpu.matmul %373, %227, %cst_116 {dimension_numbers = #tpu.dot_dimension_numbers<[1], [0], [0], [1], [0, 0, 1, 1], [], []>} : vector<8x64xf32>, vector<64x256xf32>, vector<8x256xf32> -> vector<8x256xf32>
    %379 = arith.addf %249, %378 : vector<8x256xf32>
    %380 = vector.extract_strided_slice %379 {offsets = [0, 0], sizes = [8, 192], strides = [1, 1]} : vector<8x256xf32> to vector<8x192xf32>
    %cst_117 = arith.constant 5.000000e-01 : f32
    %381 = vector.broadcast %cst_117 : f32 to vector<8x192xf32>
    %382 = arith.mulf %381, %380 : vector<8x192xf32>
    %383 = math.tanh %382 : vector<8x192xf32>
    %cst_118 = arith.constant 5.000000e-01 : f32
    %384 = vector.broadcast %cst_118 : f32 to vector<8x192xf32>
    %385 = arith.mulf %384, %383 : vector<8x192xf32>
    %cst_119 = arith.constant 5.000000e-01 : f32
    %386 = vector.broadcast %cst_119 : f32 to vector<8x192xf32>
    %387 = arith.addf %385, %386 : vector<8x192xf32>
    %388 = vector.extract_strided_slice %387 {offsets = [0, 0], sizes = [8, 64], strides = [1, 1]} : vector<8x192xf32> to vector<8x64xf32>
    %389 = vector.extract_strided_slice %387 {offsets = [0, 64], sizes = [8, 64], strides = [1, 1]} : vector<8x192xf32> to vector<8x64xf32>
    %390 = vector.extract_strided_slice %387 {offsets = [0, 128], sizes = [8, 64], strides = [1, 1]} : vector<8x192xf32> to vector<8x64xf32>
    %391 = vector.extract_strided_slice %379 {offsets = [0, 192], sizes = [8, 64], strides = [1, 1]} : vector<8x256xf32> to vector<8x64xf32>
    %392 = math.tanh %391 : vector<8x64xf32>
    %393 = arith.mulf %389, %371 : vector<8x64xf32>
    %394 = arith.mulf %388, %392 : vector<8x64xf32>
    %395 = arith.addf %393, %394 : vector<8x64xf32>
    %396 = math.tanh %395 : vector<8x64xf32>
    %397 = arith.mulf %390, %396 : vector<8x64xf32>
    %398 = vector.extract_strided_slice %397 {offsets = [0, 0], sizes = [1, 64], strides = [1, 1]} : vector<8x64xf32> to vector<1x64xf32>
    %c5_120 = arith.constant 5 : index
    %c0_121 = arith.constant 0 : index
    %399 = vector.load %arg11[%c5_120, %c0_121] : memref<8x128xf32, #tpu.memory_space<vmem>>, vector<1x64xf32>
    tpu.vector_store %arg11[%c5_120, %c0_121], %398 {strides = array<i32>} : memref<8x128xf32, #tpu.memory_space<vmem>>, vector<1x64xf32>,
    %400 = vector.extract_strided_slice %397 {offsets = [0, 0], sizes = [1, 64], strides = [1, 1]} : vector<8x64xf32> to vector<1x64xf32>
    %c2_122 = arith.constant 2 : index
    %c64_123 = arith.constant 64 : index
    %401 = vector.load %arg11[%c2_122, %c64_123] : memref<8x128xf32, #tpu.memory_space<vmem>>, vector<1x64xf32>
    tpu.vector_store %arg11[%c2_122, %c64_123], %400 {strides = array<i32>} : memref<8x128xf32, #tpu.memory_space<vmem>>, vector<1x64xf32>,
    %cst_124 = arith.constant dense<0.000000e+00> : vector<8x256xf32>
    %402 = tpu.matmul %397, %227, %cst_124 {dimension_numbers = #tpu.dot_dimension_numbers<[1], [0], [0], [1], [0, 0, 1, 1], [], []>} : vector<8x64xf32>, vector<64x256xf32>, vector<8x256xf32> -> vector<8x256xf32>
    %403 = arith.addf %252, %402 : vector<8x256xf32>
    %404 = vector.extract_strided_slice %403 {offsets = [0, 0], sizes = [8, 192], strides = [1, 1]} : vector<8x256xf32> to vector<8x192xf32>
    %cst_125 = arith.constant 5.000000e-01 : f32
    %405 = vector.broadcast %cst_125 : f32 to vector<8x192xf32>
    %406 = arith.mulf %405, %404 : vector<8x192xf32>
    %407 = math.tanh %406 : vector<8x192xf32>
    %cst_126 = arith.constant 5.000000e-01 : f32
    %408 = vector.broadcast %cst_126 : f32 to vector<8x192xf32>
    %409 = arith.mulf %408, %407 : vector<8x192xf32>
    %cst_127 = arith.constant 5.000000e-01 : f32
    %410 = vector.broadcast %cst_127 : f32 to vector<8x192xf32>
    %411 = arith.addf %409, %410 : vector<8x192xf32>
    %412 = vector.extract_strided_slice %411 {offsets = [0, 0], sizes = [8, 64], strides = [1, 1]} : vector<8x192xf32> to vector<8x64xf32>
    %413 = vector.extract_strided_slice %411 {offsets = [0, 64], sizes = [8, 64], strides = [1, 1]} : vector<8x192xf32> to vector<8x64xf32>
    %414 = vector.extract_strided_slice %411 {offsets = [0, 128], sizes = [8, 64], strides = [1, 1]} : vector<8x192xf32> to vector<8x64xf32>
    %415 = vector.extract_strided_slice %403 {offsets = [0, 192], sizes = [8, 64], strides = [1, 1]} : vector<8x256xf32> to vector<8x64xf32>
    %416 = math.tanh %415 : vector<8x64xf32>
    %417 = arith.mulf %413, %395 : vector<8x64xf32>
    %418 = arith.mulf %412, %416 : vector<8x64xf32>
    %419 = arith.addf %417, %418 : vector<8x64xf32>
    %420 = math.tanh %419 : vector<8x64xf32>
    %421 = arith.mulf %414, %420 : vector<8x64xf32>
    %422 = vector.extract_strided_slice %421 {offsets = [0, 0], sizes = [1, 64], strides = [1, 1]} : vector<8x64xf32> to vector<1x64xf32>
    %c6_128 = arith.constant 6 : index
    %c0_129 = arith.constant 0 : index
    %423 = vector.load %arg11[%c6_128, %c0_129] : memref<8x128xf32, #tpu.memory_space<vmem>>, vector<1x64xf32>
    tpu.vector_store %arg11[%c6_128, %c0_129], %422 {strides = array<i32>} : memref<8x128xf32, #tpu.memory_space<vmem>>, vector<1x64xf32>,
    %424 = vector.extract_strided_slice %421 {offsets = [0, 0], sizes = [1, 64], strides = [1, 1]} : vector<8x64xf32> to vector<1x64xf32>
    %c1_130 = arith.constant 1 : index
    %c64_131 = arith.constant 64 : index
    %425 = vector.load %arg11[%c1_130, %c64_131] : memref<8x128xf32, #tpu.memory_space<vmem>>, vector<1x64xf32>
    tpu.vector_store %arg11[%c1_130, %c64_131], %424 {strides = array<i32>} : memref<8x128xf32, #tpu.memory_space<vmem>>, vector<1x64xf32>,
    %cst_132 = arith.constant dense<0.000000e+00> : vector<8x256xf32>
    %426 = tpu.matmul %421, %227, %cst_132 {dimension_numbers = #tpu.dot_dimension_numbers<[1], [0], [0], [1], [0, 0, 1, 1], [], []>} : vector<8x64xf32>, vector<64x256xf32>, vector<8x256xf32> -> vector<8x256xf32>
    %427 = arith.addf %255, %426 : vector<8x256xf32>
    %428 = vector.extract_strided_slice %427 {offsets = [0, 0], sizes = [8, 192], strides = [1, 1]} : vector<8x256xf32> to vector<8x192xf32>
    %cst_133 = arith.constant 5.000000e-01 : f32
    %429 = vector.broadcast %cst_133 : f32 to vector<8x192xf32>
    %430 = arith.mulf %429, %428 : vector<8x192xf32>
    %431 = math.tanh %430 : vector<8x192xf32>
    %cst_134 = arith.constant 5.000000e-01 : f32
    %432 = vector.broadcast %cst_134 : f32 to vector<8x192xf32>
    %433 = arith.mulf %432, %431 : vector<8x192xf32>
    %cst_135 = arith.constant 5.000000e-01 : f32
    %434 = vector.broadcast %cst_135 : f32 to vector<8x192xf32>
    %435 = arith.addf %433, %434 : vector<8x192xf32>
    %436 = vector.extract_strided_slice %435 {offsets = [0, 0], sizes = [8, 64], strides = [1, 1]} : vector<8x192xf32> to vector<8x64xf32>
    %437 = vector.extract_strided_slice %435 {offsets = [0, 64], sizes = [8, 64], strides = [1, 1]} : vector<8x192xf32> to vector<8x64xf32>
    %438 = vector.extract_strided_slice %435 {offsets = [0, 128], sizes = [8, 64], strides = [1, 1]} : vector<8x192xf32> to vector<8x64xf32>
    %439 = vector.extract_strided_slice %427 {offsets = [0, 192], sizes = [8, 64], strides = [1, 1]} : vector<8x256xf32> to vector<8x64xf32>
    %440 = math.tanh %439 : vector<8x64xf32>
    %441 = arith.mulf %437, %419 : vector<8x64xf32>
    %442 = arith.mulf %436, %440 : vector<8x64xf32>
    %443 = arith.addf %441, %442 : vector<8x64xf32>
    %444 = math.tanh %443 : vector<8x64xf32>
    %445 = arith.mulf %438, %444 : vector<8x64xf32>
    %446 = vector.extract_strided_slice %445 {offsets = [0, 0], sizes = [1, 64], strides = [1, 1]} : vector<8x64xf32> to vector<1x64xf32>
    %c7_136 = arith.constant 7 : index
    %c0_137 = arith.constant 0 : index
    %447 = vector.load %arg11[%c7_136, %c0_137] : memref<8x128xf32, #tpu.memory_space<vmem>>, vector<1x64xf32>
    tpu.vector_store %arg11[%c7_136, %c0_137], %446 {strides = array<i32>} : memref<8x128xf32, #tpu.memory_space<vmem>>, vector<1x64xf32>,
    %448 = vector.extract_strided_slice %445 {offsets = [0, 0], sizes = [1, 64], strides = [1, 1]} : vector<8x64xf32> to vector<1x64xf32>
    %c0_138 = arith.constant 0 : index
    %c64_139 = arith.constant 64 : index
    %449 = vector.load %arg11[%c0_138, %c64_139] : memref<8x128xf32, #tpu.memory_space<vmem>>, vector<1x64xf32>
    tpu.vector_store %arg11[%c0_138, %c64_139], %448 {strides = array<i32>} : memref<8x128xf32, #tpu.memory_space<vmem>>, vector<1x64xf32>,
    %c0_140 = arith.constant 0 : index
    %c0_141 = arith.constant 0 : index
    %450 = vector.load %arg11[%c0_140, %c0_141] : memref<8x128xf32, #tpu.memory_space<vmem>>, vector<8x128xf32>
    %c0_142 = arith.constant 0 : index
    %c0_143 = arith.constant 0 : index
    %451 = vector.load %arg7[%c0_142, %c0_143] : memref<128x1xf32, #tpu.memory_space<vmem>>, vector<128x1xf32>
    %cst_144 = arith.constant dense<0.000000e+00> : vector<8x1xf32>
    %452 = tpu.matmul %450, %451, %cst_144 {dimension_numbers = #tpu.dot_dimension_numbers<[1], [0], [0], [1], [0, 0, 1, 1], [], []>} : vector<8x128xf32>, vector<128x1xf32>, vector<8x1xf32> -> vector<8x1xf32>
    %c0_145 = arith.constant 0 : index
    %c0_146 = arith.constant 0 : index
    %453 = vector.load %arg8[%c0_145, %c0_146] : memref<1x1xf32, #tpu.memory_space<vmem>>, vector<1x1xf32>
    %454 = vector.broadcast %453 : vector<1x1xf32> to vector<8x1xf32>
    %455 = arith.addf %452, %454 : vector<8x1xf32>
    %cst_147 = arith.constant 5.000000e-01 : f32
    %456 = vector.broadcast %cst_147 : f32 to vector<8x1xf32>
    %457 = arith.mulf %456, %455 : vector<8x1xf32>
    %458 = math.tanh %457 : vector<8x1xf32>
    %cst_148 = arith.constant 5.000000e-01 : f32
    %459 = vector.broadcast %cst_148 : f32 to vector<8x1xf32>
    %460 = arith.mulf %459, %458 : vector<8x1xf32>
    %cst_149 = arith.constant 5.000000e-01 : f32
    %461 = vector.broadcast %cst_149 : f32 to vector<8x1xf32>
    %462 = arith.addf %460, %461 : vector<8x1xf32>
    %c0_150 = arith.constant 0 : index
    %c0_151 = arith.constant 0 : index
    %463 = vector.load %arg9[%c0_150, %c0_151] : memref<8x1xf32, #tpu.memory_space<vmem>>, vector<8x1xf32>
    tpu.vector_store %arg9[%c0_150, %c0_151], %462 {strides = array<i32>} : memref<8x1xf32, #tpu.memory_space<vmem>>, vector<8x1xf32>,
    return
  }
}

</mosaic_0001>

<bundles_post_ra>
// kernel: bilstm_classifier_forward.1
= control target key start
LH: loop header
LB: loop body
LE: loop exit
PB: predicated region body
PF: predicated region fallthrough
CT: control target
= control target key end

     0   :  { %s3516_s0 = inlined_call_operand.vmem [shape: f32[8,32], index: 0, kind: input, shape index: {}]   ;;  %s3517_s1 = inlined_call_operand.vmem [shape: f32[32,256], index: 1, kind: input, shape index: {}]   ;;  %s3518_s2 = inlined_call_operand.vmem [shape: f32[64,256], index: 2, kind: input, shape index: {}]   ;;  %s3519_s3 = inlined_call_operand.vmem [shape: f32[1,256], index: 3, kind: input, shape index: {}]   ;;  %s3520_s4 = inlined_call_operand.hbm [shape: f32[128,256], index: 4, kind: input, shape index: {}]   ;;  %s3521_s5 = inlined_call_operand.hbm [shape: f32[64,256], index: 5, kind: input, shape index: {}]   ;;  %s3522_s6 = inlined_call_operand.vmem [shape: f32[1,256], index: 6, kind: input, shape index: {}]   ;;  %s3523_s7 = inlined_call_operand.vmem [shape: f32[128,1], index: 7, kind: input, shape index: {}]   ;;  %s3524_s8 = inlined_call_operand.<no memory space> [shape: f32[1,1], index: 8, kind: input, shape index: {}]   ;;  %s3525_s9 = inlined_call_operand.vmem [shape: f32[8,1], index: 9, kind: output, shape index: {}]  }
   0x1   :  { %v14_v0 = vstv %s3524_s8 }
   0x2   :  { %15 = vst [vmem:[#allocation4] sm:$0x1] %v14_v0 }
   0x3   :  { %16 = vsyncpa [#allocation6], 0 }
   0x4   :  { %17 = vsyncpa [#allocation8], 0  ;;  %s2828_s11 = smov [#allocation5]   ;;  %s2780_s15 = scalar_lea.hbm %s3520_s4, 4096 }
   0x5   :  { %s31_s12 = sshll.u32 %s2828_s11, 4  ;;  %p2781_p0 = scmp.ne.s32.totalorder %s3520_s4, %s2780_s15  ;;  %s32_s12 = int_to_ptr.vmem [resolvable:$true] %s31_s12 }
   0x6   :  { %p2784_p1 = scmp.lt.u32.totalorder %s2780_s15, %s3520_s4 }
   0x8   :  { %p2786_p2 = pnand %p2784_p1, %p2781_p0 }
   0xa   :  { %2789 = shalt.err (!%p2786_p2)
}
   0xb   :  { %s2790_s8 = scalar_lea.vmem %s32_s12, 4096  ;;  %p2795_p4 = scmp.lt.s32.totalorder %s32_s12, %s32_s12 }
   0xc   :  { %p2791_p3 = scmp.ne.s32.totalorder %s32_s12, %s2790_s8  ;;  %p2796_p5 = scmp.lt.s32.totalorder %s2790_s8, %s2790_s8 }
   0xe   :  { %p2797_p6 = por %p2796_p5, %p2795_p4 }
  0x10   :  { %p2798_p7 = pnand %p2797_p6, %p2791_p3 }
  0x12   :  { %2801 = shalt.err (!%p2798_p7)
}
  0x13   :  { %s2829_s20 = smov 256   ;;  %s2830_s21 = smov 16  }
  0x14   :  { %37 = dma.hbm_to_vmem [thread:$0]  %s3520_s4, 4096, %s32_s12, [#allocation6], %s2829_s20, %s2829_s20, %s2830_s21  }
  0x15   :  { %s2831_s24 = smov [#allocation7]   ;;  %s2802_s28 = scalar_lea.hbm %s3521_s5, 2048 }
  0x16   :  { %s43_s25 = sshll.u32 %s2831_s24, 4  ;;  %p2803_p8 = scmp.ne.s32.totalorder %s3521_s5, %s2802_s28  ;;  %s44_s25 = int_to_ptr.vmem [resolvable:$true] %s43_s25 }
  0x17   :  { %p2806_p9 = scmp.lt.u32.totalorder %s2802_s28, %s3521_s5 }
  0x19   :  { %p2808_p10 = pnand %p2806_p9, %p2803_p8 }
  0x1b   :  { %2811 = shalt.err (!%p2808_p10)
}
  0x1c   :  { %s2812_s13 = scalar_lea.vmem %s44_s25, 2048  ;;  %p2817_p12 = scmp.lt.s32.totalorder %s44_s25, %s44_s25 }
  0x1d   :  { %p2813_p11 = scmp.ne.s32.totalorder %s44_s25, %s2812_s13  ;;  %p2818_p13 = scmp.lt.s32.totalorder %s2812_s13, %s2812_s13 }
  0x1f   :  { %p2819_p0 = por %p2818_p13, %p2817_p12 }
  0x21   :  { %p2820_p1 = pnand %p2819_p0, %p2813_p11 }
  0x23   :  { %2823 = shalt.err (!%p2820_p1)
}
  0x24   :  { %49 = dma.hbm_to_vmem [thread:$0]  %s3521_s5, 2048, %s44_s25, [#allocation8], %s2829_s20, %s2829_s20, %s2830_s21  }
  0x25   :  { %2824 = dma.done.wait [#allocation6], 4096  }
  0x26   :  { %2825 = vsyncadd [#allocation6], 4294963200 }
  0x27   :  { %2826 = dma.done.wait [#allocation8], 2048  }
  0x28   :  { %2827 = vsyncadd [#allocation8], 4294965248  ;;  %v2832_v1 = vmov 0.0   ;;  %v64_v2 = vld [vmem:[%s3517_s1 + $0x8] sm:$0xff]  ;;  %v66_v3 = vld [vmem:[%s3517_s1 + $0x18] sm:$0xff]  ;;  %vm99_vm0 = vcmask 261120   ;;  %v89_v39 = vlaneseq }
  0x29   :  { %167 = vmatprep.mubr.f32.mxu0 %v2832_v1  ;;  %522 = vmatprep.mubr.f32.mxu1 %v2832_v1  ;;  %v63_v4 = vld [vmem:[%s3517_s1] sm:$0xff]  ;;  %v2322_v5 = vpack.c.bf16 %v66_v3, %v64_v2  ;;  %v65_v6 = vld [vmem:[%s3517_s1 + $0x10] sm:$0xff]  ;;  %v68_v7 = vld [vmem:[%s3517_s1 + $0x28] sm:$0xff]  ;;  %vm341_vm1 = vcmask 516096   ;;  %vm238_vm2 = vcmask 523264   ;;  %vm347_vm3 = vcmask 1040896  }
  0x2a   :  { %v70_v8 = vld [vmem:[%s3517_s1 + $0x38] sm:$0xff]  ;;  %v2324_v9 = vpack.c.bf16 %v65_v6, %v63_v4  ;;  %v67_v11 = vld [vmem:[%s3517_s1 + $0x20] sm:$0xff]  ;;  %v69_v12 = vld [vmem:[%s3517_s1 + $0x30] sm:$0xff]  ;;  %v3035_v40 = vshrl.u32 %v89_v39, 7  ;;  %vm2835_vm4 = vmmov 0   ;;  %vm2246_vm5 = vcmask 7168  }
  0x2b   :  { %v2326_v10 = vpack.c.bf16 %v70_v8, %v68_v7  ;;  %2323 = vmatprep.subr.bf16.mxu0 %v2322_v5  ;;  %v72_v13 = vld [vmem:[%s3518_s2 + $0x8] sm:$0xff]  ;;  %v74_v14 = vld [vmem:[%s3518_s2 + $0x18] sm:$0xff]  ;;  %v71_v15 = vld [vmem:[%s3518_s2] sm:$0xff]  ;;  %v2328_v16 = vpack.c.bf16 %v69_v12, %v67_v11 }
  0x2c   :  { %2325 = vmatpush1.bf16.msra.mxu0 %v2324_v9  ;;  %v2948_v17 = vpack.c.bf16 %v74_v14, %v72_v13  ;;  %v73_v18 = vld [vmem:[%s3518_s2 + $0x10] sm:$0xff]  ;;  %v76_v19 = vld [vmem:[%s3518_s2 + $0x28] sm:$0xff]  ;;  %v78_v20 = vld [vmem:[%s3518_s2 + $0x38] sm:$0xff]  ;;  %v3038_v43 = vsub.s32 0, %v3035_v40  ;;  %v3044_v45 = vsub.s32 1, %v3035_v40 }
  0x2d   :  { %2327 = vmatprep.subr.bf16.mxu0 %v2326_v10  ;;  %v2959_v21 = vpack.c.bf16 %v73_v18, %v71_v15  ;;  %v2961_v22 = vpack.c.bf16 %v78_v20, %v76_v19  ;;  %v75_v23 = vld [vmem:[%s3518_s2 + $0x20] sm:$0xff]  ;;  %v77_v24 = vld [vmem:[%s3518_s2 + $0x30] sm:$0xff]  ;;  %v80_v26 = vld [vmem:[%s3518_s2 + $0x48] sm:$0xff] }
  0x2e   :  { %2363 = vmatprep.subr.bf16.mxu1 %v2948_v17  ;;  %v62_v25 = vld [vmem:[%s3516_s0] sm:$0xff]  ;;  %v82_v27 = vld [vmem:[%s3518_s2 + $0x58] sm:$0xff]  ;;  %v2982_v28 = vpack.c.bf16 %v77_v24, %v75_v23  ;;  %v81_v30 = vld [vmem:[%s3518_s2 + $0x50] sm:$0xff] }
  0x2f   :  { %2365 = vmatpush1.bf16.msra.mxu1 %v2959_v21  ;;  %v79_v29 = vld [vmem:[%s3518_s2 + $0x40] sm:$0xff]  ;;  %v2990_v31 = vpack.c.bf16 %v82_v27, %v80_v26  ;;  %v84_v32 = vld [vmem:[%s3518_s2 + $0x68] sm:$0xff]  ;;  %v86_v33 = vld [vmem:[%s3518_s2 + $0x78] sm:$0xff] }
  0x30   :  { %2329 = vmatpush1.bf16.msra.mxu0 %v2328_v16  ;;  %2367 = vmatprep.subr.bf16.mxu1 %v2961_v22  ;;  %v3002_v34 = vpack.c.bf16 %v81_v30, %v79_v29  ;;  %v3005_v35 = vpack.c.bf16 %v86_v33, %v84_v32  ;;  %v83_v36 = vld [vmem:[%s3518_s2 + $0x60] sm:$0xff]  ;;  %v85_v37 = vld [vmem:[%s3518_s2 + $0x70] sm:$0xff] }
  0x31   :  { %2331 = vmatprep.subr.bf16.mxu0 %v2948_v17  ;;  %v3017_v38 = vpack.c.bf16 %v85_v37, %v83_v36  ;;  %v87_v44 = vld [vmem:[%s3519_s3] sm:$0x3]  ;;  %s2833_s3 = smov 64  }
  0x32   :  { %v92_v46 = vrot.slane %v87_v44, %v3038_v43  ;;  %v96_v47 = vrot.slane %v87_v44, %v3044_v45 }
  0x33   :  { %2254 = vmatmul.mubr.msk.f32.vlgmr.msra.gmra.mrb[0].mxu0 %vm99_vm0, %v62_v25  ;;  %2369 = vmatpush1.bf16.msra.mxu1 %v2982_v28 }
  0x34   :  { %2333 = vmatpush1.bf16.msra.mxu0 %v2959_v21  ;;  %306 = vmatprep.mubr.f32.mxu0 %v2832_v1 }
  0x35   :  { %2335 = vmatprep.subr.bf16.mxu0 %v2961_v22  ;;  %2371 = vmatprep.subr.bf16.mxu1 %v2990_v31 }
  0x37   :  { %2373 = vmatpush1.bf16.msra.mxu1 %v3002_v34 }
  0x38   :  { %2337 = vmatpush1.bf16.msra.mxu0 %v2982_v28  ;;  %2375 = vmatprep.subr.bf16.mxu1 %v3005_v35 }
  0x39   :  { %2339 = vmatprep.subr.bf16.mxu0 %v2990_v31 }
  0x3b   :  { %2377 = vmatpush1.bf16.msra.mxu1 %v3017_v38 }
  0x3c   :  { %2341 = vmatpush1.bf16.msra.mxu0 %v3002_v34  ;;  %2395 = vmatprep.subr.bf16.mxu1 %v2948_v17 }
  0x3d   :  { %2343 = vmatprep.subr.bf16.mxu0 %v3005_v35 }
  0x40   :  { %2345 = vmatpush1.bf16.msra.mxu0 %v3017_v38 }
  0x41   :  { %2347 = vmatprep.subr.bf16.mxu0 %v2948_v17 }
  0x43   :  { %307 = vmatmul.mubr.f32.vlgmr.msra.gmra.mrb[2].mxu0 %v2832_v1 }
  0x44   :  { %2349 = vmatpush1.bf16.msra.mxu0 %v2959_v21  ;;  %415 = vmatprep.mubr.f32.mxu0 %v2832_v1 }
  0x45   :  { %2351 = vmatprep.subr.bf16.mxu0 %v2961_v22 }
  0x48   :  { %2353 = vmatpush1.bf16.msra.mxu0 %v2982_v28 }
  0x49   :  { %2355 = vmatprep.subr.bf16.mxu0 %v2990_v31 }
  0x4c   :  { %2357 = vmatpush1.bf16.msra.mxu0 %v3002_v34 }
  0x4d   :  { %2359 = vmatprep.subr.bf16.mxu0 %v3005_v35 }
  0x50   :  { %2361 = vmatpush1.bf16.msra.mxu0 %v3017_v38 }
  0x51   :  { %2379 = vmatprep.subr.bf16.mxu0 %v2948_v17 }
 0x106   :  { %v169_v41 = vpop.f32.mrb[0].mxu0 }
 0x107   :  { %v171_v42 = vpop.f32.mrb[1].mxu0  ;;  %v3048_v48 = vadd.f32 %v169_v41, %v92_v46 }
 0x108   :  { %v3050_v49 = vadd.f32 %v171_v42, %v96_v47  ;;  %v3097_v42 = vsub.s32 2, %v3035_v40 }
 0x109   :  { %v177_v50 = vrot.slane %v3048_v48, %v3038_v43  ;;  %v185_v10 = vrot.slane %v3048_v48, %v3044_v45 }
 0x10a   :  { %v181_v52 = vrot.slane %v3050_v49, %v3038_v43  ;;  %v189_v12 = vrot.slane %v3050_v49, %v3044_v45  ;;  %v193_v44 = vrot.slane %v3048_v48, %v3097_v42  ;;  %v197_v47 = vrot.slane %v3050_v49, %v3097_v42 }
 0x116   :  { %v308_v51 = vpop.f32.mrb[2].mxu0 }
 0x117   :  { %v313_v53 = vadd.f32 %v308_v51, %v177_v50  ;;  %v310_v54 = vpop.f32.mrb[3].mxu0 }
 0x118   :  { %v314_v55 = vadd.f32 %v310_v54, %v181_v52 }
 0x119   :  { %v315_v57 = vmul.f32 0.5, %v313_v53 }
 0x11a   :  { %2650 = vtanh.f32 %v314_v55  ;;  %v316_v4 = vmul.f32 0.5, %v314_v55 }
 0x11b   :  { %2652 = vtanh.f32 %v315_v57 }
 0x124   :  { %v2651_v56 = vpop.eup %2650 }
 0x125   :  { %326 = vrot.lane.b32.xlu0 %v2651_v56, %s2833_s3  ;;  %v2653_v58 = vpop.eup %2652 }
 0x126   :  { %v319_v59 = vmul.f32 0.5, %v2653_v58 }
 0x128   :  { %v321_v60 = vadd.f32 0.5, %v319_v59 }
 0x12a   :  { %v324_v63 = vmul.f32 0.0, %v321_v60 }
 0x197   :  { %v327_v61 = vpop.permute.xlu0 %326 }
 0x198   :  { %v329_v62 = vmul.f32 %v327_v61, %v321_v60 }
 0x19a   :  { %331 = vrot.lane.b32.xlu0 %v329_v62, %s2833_s3 }
 0x20c   :  { %v332_v0 = vpop.permute.xlu0 %331 }
 0x20d   :  { %v334_v2 = vadd.f32 %v332_v0, %v324_v63 }
 0x20f   :  { %2654 = vtanh.f32 %v334_v2 }
 0x210   :  { %2656 = vtanh.f32 %v316_v4 }
 0x219   :  { %v2655_v3 = vpop.eup %2654 }
 0x21a   :  { %337 = vrot.lane.b32.xlu1 %v2655_v3, %s2833_s3  ;;  %v2657_v5 = vpop.eup %2656 }
 0x21b   :  { %v320_v6 = vmul.f32 0.5, %v2657_v5 }
 0x21d   :  { %v322_v7 = vadd.f32 0.5, %v320_v6 }
 0x28c   :  { %v338_v8 = vpop.permute.xlu1 %337 }
 0x28d   :  { %v3059_v9 = vmul.f32 %v338_v8, %v322_v7  ;;  %v3122_v7 = vsub.s32 3, %v3035_v40 }
 0x28f   :  { %342 = vst.msk [vmem:[#allocation2] sm:$0x1] %vm341_vm1, %v3059_v9  ;;  %2255 = vmatmul.mubr.msk.f32.vlgmr.msra.gmra.mrb[4].mxu0 %vm238_vm2, %v3059_v9  ;;  %v201_v8 = vrot.slane %v3048_v48, %v3122_v7 }
 0x290   :  { %2381 = vmatpush1.bf16.msra.mxu0 %v2959_v21  ;;  %629 = vmatprep.mubr.f32.mxu0 %v2832_v1 }
 0x291   :  { %2383 = vmatprep.subr.bf16.mxu0 %v2961_v22 }
 0x294   :  { %2385 = vmatpush1.bf16.msra.mxu0 %v2982_v28 }
 0x295   :  { %2387 = vmatprep.subr.bf16.mxu0 %v2990_v31 }
 0x298   :  { %2389 = vmatpush1.bf16.msra.mxu0 %v3002_v34 }
 0x299   :  { %2391 = vmatprep.subr.bf16.mxu0 %v3005_v35 }
 0x29c   :  { %2393 = vmatpush1.bf16.msra.mxu0 %v3017_v38 }
 0x29d   :  { %2411 = vmatprep.subr.bf16.mxu0 %v2948_v17 }
 0x362   :  { %v417_v11 = vpop.f32.mrb[4].mxu0 }
 0x363   :  { %v422_v13 = vadd.f32 %v417_v11, %v185_v10  ;;  %v419_v14 = vpop.f32.mrb[5].mxu0  ;;  %v205_v11 = vrot.slane %v3050_v49, %v3122_v7 }
 0x364   :  { %v423_v15 = vadd.f32 %v419_v14, %v189_v12 }
 0x365   :  { %v424_v18 = vmul.f32 0.5, %v422_v13 }
 0x366   :  { %2658 = vtanh.f32 %v423_v15  ;;  %v425_v32 = vmul.f32 0.5, %v423_v15 }
 0x367   :  { %2660 = vtanh.f32 %v424_v18 }
 0x370   :  { %v2659_v16 = vpop.eup %2658 }
 0x371   :  { %435 = vrot.lane.b32.xlu1 %v2659_v16, %s2833_s3  ;;  %v2661_v19 = vpop.eup %2660 }
 0x372   :  { %v428_v20 = vmul.f32 0.5, %v2661_v19 }
 0x374   :  { %v430_v23 = vadd.f32 0.5, %v428_v20 }
 0x376   :  { %v433_v26 = vmul.f32 %v430_v23, %v334_v2 }
 0x3e3   :  { %v436_v24 = vpop.permute.xlu1 %435 }
 0x3e4   :  { %v438_v25 = vmul.f32 %v436_v24, %v430_v23 }
 0x3e6   :  { %440 = vrot.lane.b32.xlu0 %v438_v25, %s2833_s3 }
 0x458   :  { %v441_v27 = vpop.permute.xlu0 %440 }
 0x459   :  { %v443_v29 = vadd.f32 %v441_v27, %v433_v26 }
 0x45b   :  { %2662 = vtanh.f32 %v443_v29 }
 0x45c   :  { %2664 = vtanh.f32 %v425_v32 }
 0x465   :  { %v2663_v30 = vpop.eup %2662 }
 0x466   :  { %446 = vrot.lane.b32.xlu1 %v2663_v30, %s2833_s3  ;;  %v2665_v33 = vpop.eup %2664 }
 0x467   :  { %v429_v36 = vmul.f32 0.5, %v2665_v33 }
 0x469   :  { %v431_v37 = vadd.f32 0.5, %v429_v36 }
 0x4d8   :  { %v447_v39 = vpop.permute.xlu1 %446 }
 0x4d9   :  { %v3081_v41 = vmul.f32 %v447_v39, %v431_v37  ;;  %v3146_v39 = vsub.s32 4, %v3035_v40 }
 0x4db   :  { %450 = vst.msk [vmem:[#allocation2 + $0x1] sm:$0x1] %vm341_vm1, %v3081_v41  ;;  %2256 = vmatmul.mubr.msk.f32.vlgmr.msra.gmra.mrb[0].mxu1 %vm238_vm2, %v3081_v41 }
 0x4dc   :  { %2397 = vmatpush1.bf16.msra.mxu1 %v2959_v21  ;;  %736 = vmatprep.mubr.f32.mxu1 %v2832_v1 }
 0x4dd   :  { %2399 = vmatprep.subr.bf16.mxu1 %v2961_v22 }
 0x4e0   :  { %2401 = vmatpush1.bf16.msra.mxu1 %v2982_v28 }
 0x4e1   :  { %2403 = vmatprep.subr.bf16.mxu1 %v2990_v31 }
 0x4e4   :  { %2405 = vmatpush1.bf16.msra.mxu1 %v3002_v34 }
 0x4e5   :  { %2407 = vmatprep.subr.bf16.mxu1 %v3005_v35 }
 0x4e8   :  { %2409 = vmatpush1.bf16.msra.mxu1 %v3017_v38 }
 0x4e9   :  { %2427 = vmatprep.subr.bf16.mxu1 %v2948_v17 }
 0x5ae   :  { %v524_v46 = vpop.f32.mrb[0].mxu1 }
 0x5af   :  { %v529_v50 = vadd.f32 %v524_v46, %v193_v44  ;;  %v526_v51 = vpop.f32.mrb[1].mxu1  ;;  %v209_v44 = vrot.slane %v3048_v48, %v3146_v39 }
 0x5b0   :  { %v530_v52 = vadd.f32 %v526_v51, %v197_v47  ;;  %v213_v47 = vrot.slane %v3050_v49, %v3146_v39 }
 0x5b1   :  { %v531_v54 = vmul.f32 0.5, %v529_v50 }
 0x5b2   :  { %2666 = vtanh.f32 %v530_v52  ;;  %v532_v0 = vmul.f32 0.5, %v530_v52 }
 0x5b3   :  { %2668 = vtanh.f32 %v531_v54 }
 0x5bc   :  { %v2667_v53 = vpop.eup %2666 }
 0x5bd   :  { %542 = vrot.lane.b32.xlu0 %v2667_v53, %s2833_s3  ;;  %v2669_v55 = vpop.eup %2668 }
 0x5be   :  { %v535_v56 = vmul.f32 0.5, %v2669_v55 }
 0x5c0   :  { %v537_v57 = vadd.f32 0.5, %v535_v56 }
 0x5c2   :  { %v540_v60 = vmul.f32 %v537_v57, %v443_v29 }
 0x62f   :  { %v543_v58 = vpop.permute.xlu0 %542 }
 0x630   :  { %v545_v59 = vmul.f32 %v543_v58, %v537_v57 }
 0x632   :  { %547 = vrot.lane.b32.xlu1 %v545_v59, %s2833_s3 }
 0x6a4   :  { %v548_v61 = vpop.permute.xlu1 %547 }
 0x6a5   :  { %v550_v62 = vadd.f32 %v548_v61, %v540_v60 }
 0x6a7   :  { %2670 = vtanh.f32 %v550_v62 }
 0x6a8   :  { %2672 = vtanh.f32 %v532_v0 }
 0x6b1   :  { %v2671_v63 = vpop.eup %2670 }
 0x6b2   :  { %553 = vrot.lane.b32.xlu0 %v2671_v63, %s2833_s3  ;;  %v2673_v2 = vpop.eup %2672 }
 0x6b3   :  { %v536_v3 = vmul.f32 0.5, %v2673_v2 }
 0x6b5   :  { %v538_v4 = vadd.f32 0.5, %v536_v3 }
 0x724   :  { %v554_v5 = vpop.permute.xlu0 %553 }
 0x725   :  { %v3106_v6 = vmul.f32 %v554_v5, %v538_v4 }
 0x727   :  { %557 = vst.msk [vmem:[#allocation2 + $0x2] sm:$0x1] %vm341_vm1, %v3106_v6  ;;  %2257 = vmatmul.mubr.msk.f32.vlgmr.msra.gmra.mrb[6].mxu0 %vm238_vm2, %v3106_v6 }
 0x728   :  { %2413 = vmatpush1.bf16.msra.mxu0 %v2959_v21  ;;  %843 = vmatprep.mubr.f32.mxu0 %v2832_v1 }
 0x729   :  { %2415 = vmatprep.subr.bf16.mxu0 %v2961_v22 }
 0x72c   :  { %2417 = vmatpush1.bf16.msra.mxu0 %v2982_v28 }
 0x72d   :  { %2419 = vmatprep.subr.bf16.mxu0 %v2990_v31 }
 0x730   :  { %2421 = vmatpush1.bf16.msra.mxu0 %v3002_v34 }
 0x731   :  { %2423 = vmatprep.subr.bf16.mxu0 %v3005_v35 }
 0x734   :  { %2425 = vmatpush1.bf16.msra.mxu0 %v3017_v38 }
 0x735   :  { %2443 = vmatprep.subr.bf16.mxu0 %v2948_v17 }
 0x7fa   :  { %v631_v10 = vpop.f32.mrb[6].mxu0 }
 0x7fb   :  { %v636_v12 = vadd.f32 %v631_v10, %v201_v8  ;;  %v633_v13 = vpop.f32.mrb[7].mxu0  ;;  %v3168_v10 = vsub.s32 5, %v3035_v40 }
 0x7fc   :  { %v637_v14 = vadd.f32 %v633_v13, %v205_v11 }
 0x7fd   :  { %v638_v16 = vmul.f32 0.5, %v636_v12 }
 0x7fe   :  { %2674 = vtanh.f32 %v637_v14  ;;  %v639_v29 = vmul.f32 0.5, %v637_v14 }
 0x7ff   :  { %2676 = vtanh.f32 %v638_v16 }
 0x808   :  { %v2675_v15 = vpop.eup %2674 }
 0x809   :  { %649 = vrot.lane.b32.xlu1 %v2675_v15, %s2833_s3  ;;  %v2677_v17 = vpop.eup %2676 }
 0x80a   :  { %v642_v18 = vmul.f32 0.5, %v2677_v17 }
 0x80c   :  { %v644_v19 = vadd.f32 0.5, %v642_v18 }
 0x80e   :  { %v647_v24 = vmul.f32 %v644_v19, %v550_v62 }
 0x87b   :  { %v650_v20 = vpop.permute.xlu1 %649 }
 0x87c   :  { %v652_v23 = vmul.f32 %v650_v20, %v644_v19 }
 0x87e   :  { %654 = vrot.lane.b32.xlu0 %v652_v23, %s2833_s3 }
 0x8f0   :  { %v655_v25 = vpop.permute.xlu0 %654 }
 0x8f1   :  { %v657_v26 = vadd.f32 %v655_v25, %v647_v24 }
 0x8f3   :  { %2678 = vtanh.f32 %v657_v26 }
 0x8f4   :  { %2680 = vtanh.f32 %v639_v29 }
 0x8fd   :  { %v2679_v27 = vpop.eup %2678 }
 0x8fe   :  { %660 = vrot.lane.b32.xlu1 %v2679_v27, %s2833_s3  ;;  %v2681_v30 = vpop.eup %2680 }
 0x8ff   :  { %v643_v32 = vmul.f32 0.5, %v2681_v30  ;;  %v3183_v30 = vsub.s32 6, %v3035_v40 }
 0x901   :  { %v645_v33 = vadd.f32 0.5, %v643_v32  ;;  %v225_v32 = vrot.slane %v3048_v48, %v3183_v30 }
 0x970   :  { %v661_v36 = vpop.permute.xlu1 %660 }
 0x971   :  { %v3131_v37 = vmul.f32 %v661_v36, %v645_v33  ;;  %v229_v36 = vrot.slane %v3050_v49, %v3183_v30 }
 0x973   :  { %664 = vst.msk [vmem:[#allocation2 + $0x3] sm:$0x1] %vm341_vm1, %v3131_v37  ;;  %2258 = vmatmul.mubr.msk.f32.vlgmr.msra.gmra.mrb[2].mxu1 %vm238_vm2, %v3131_v37 }
 0x974   :  { %2429 = vmatpush1.bf16.msra.mxu1 %v2959_v21  ;;  %950 = vmatprep.mubr.f32.mxu1 %v2832_v1 }
 0x975   :  { %2431 = vmatprep.subr.bf16.mxu1 %v2961_v22 }
 0x978   :  { %2433 = vmatpush1.bf16.msra.mxu1 %v2982_v28 }
 0x979   :  { %2435 = vmatprep.subr.bf16.mxu1 %v2990_v31 }
 0x97c   :  { %2437 = vmatpush1.bf16.msra.mxu1 %v3002_v34 }
 0x97d   :  { %2439 = vmatprep.subr.bf16.mxu1 %v3005_v35 }
 0x980   :  { %2441 = vmatpush1.bf16.msra.mxu1 %v3017_v38 }
 0xa46   :  { %v738_v46 = vpop.f32.mrb[2].mxu1 }
 0xa47   :  { %v743_v50 = vadd.f32 %v738_v46, %v209_v44  ;;  %v740_v51 = vpop.f32.mrb[3].mxu1 }
 0xa48   :  { %v744_v52 = vadd.f32 %v740_v51, %v213_v47 }
 0xa49   :  { %v745_v54 = vmul.f32 0.5, %v743_v50 }
 0xa4a   :  { %2682 = vtanh.f32 %v744_v52  ;;  %v746_v0 = vmul.f32 0.5, %v744_v52 }
 0xa4b   :  { %2684 = vtanh.f32 %v745_v54 }
 0xa54   :  { %v2683_v53 = vpop.eup %2682 }
 0xa55   :  { %756 = vrot.lane.b32.xlu0 %v2683_v53, %s2833_s3  ;;  %v2685_v55 = vpop.eup %2684 }
 0xa56   :  { %v749_v56 = vmul.f32 0.5, %v2685_v55 }
 0xa58   :  { %v751_v57 = vadd.f32 0.5, %v749_v56 }
 0xa5a   :  { %v754_v60 = vmul.f32 %v751_v57, %v657_v26 }
 0xac7   :  { %v757_v58 = vpop.permute.xlu0 %756 }
 0xac8   :  { %v759_v59 = vmul.f32 %v757_v58, %v751_v57 }
 0xaca   :  { %761 = vrot.lane.b32.xlu1 %v759_v59, %s2833_s3 }
 0xb3c   :  { %v762_v61 = vpop.permute.xlu1 %761 }
 0xb3d   :  { %v764_v62 = vadd.f32 %v762_v61, %v754_v60 }
 0xb3f   :  { %2686 = vtanh.f32 %v764_v62 }
 0xb40   :  { %2688 = vtanh.f32 %v746_v0 }
 0xb49   :  { %v2687_v63 = vpop.eup %2686 }
 0xb4a   :  { %767 = vrot.lane.b32.xlu0 %v2687_v63, %s2833_s3  ;;  %v2689_v2 = vpop.eup %2688 }
 0xb4b   :  { %v750_v3 = vmul.f32 0.5, %v2689_v2 }
 0xb4d   :  { %v752_v4 = vadd.f32 0.5, %v750_v3 }
 0xbbc   :  { %v768_v5 = vpop.permute.xlu0 %767 }
 0xbbd   :  { %v3155_v8 = vmul.f32 %v768_v5, %v752_v4  ;;  %v3198_v4 = vsub.s32 7, %v3035_v40 }
 0xbbf   :  { %2259 = vmatmul.mubr.msk.f32.vlgmr.msra.gmra.mrb[8].mxu0 %vm238_vm2, %v3155_v8  ;;  %v233_v5 = vrot.slane %v3048_v48, %v3198_v4 }
 0xbc0   :  { %2445 = vmatpush1.bf16.msra.mxu0 %v2959_v21  ;;  %1057 = vmatprep.mubr.f32.mxu0 %v2832_v1  ;;  %v217_v21 = vrot.slane %v3048_v48, %v3168_v10 }
 0xbc1   :  { %2447 = vmatprep.subr.bf16.mxu0 %v2961_v22  ;;  %v221_v22 = vrot.slane %v3050_v49, %v3168_v10 }
 0xbc4   :  { %2449 = vmatpush1.bf16.msra.mxu0 %v2982_v28 }
 0xbc5   :  { %2451 = vmatprep.subr.bf16.mxu0 %v2990_v31 }
 0xbc8   :  { %2453 = vmatpush1.bf16.msra.mxu0 %v3002_v34 }
 0xbc9   :  { %2455 = vmatprep.subr.bf16.mxu0 %v3005_v35 }
 0xbcc   :  { %2457 = vmatpush1.bf16.msra.mxu0 %v3017_v38 }
 0xc92   :  { %v845_v11 = vpop.f32.mrb[8].mxu0 }
 0xc93   :  { %v850_v12 = vadd.f32 %v845_v11, %v217_v21  ;;  %v847_v28 = vpop.f32.mrb[9].mxu0  ;;  %v237_v11 = vrot.slane %v3050_v49, %v3198_v4 }
 0xc94   :  { %v851_v13 = vadd.f32 %v847_v28, %v221_v22 }
 0xc95   :  { %v852_v34 = vmul.f32 0.5, %v850_v12 }
 0xc96   :  { %2690 = vtanh.f32 %v851_v13  ;;  %v853_v23 = vmul.f32 0.5, %v851_v13 }
 0xc97   :  { %2692 = vtanh.f32 %v852_v34 }
 0xca0   :  { %v2691_v31 = vpop.eup %2690 }
 0xca1   :  { %863 = vrot.lane.b32.xlu1 %v2691_v31, %s2833_s3  ;;  %v2693_v35 = vpop.eup %2692 }
 0xca2   :  { %v856_v38 = vmul.f32 0.5, %v2693_v35 }
 0xca4   :  { %v858_v14 = vadd.f32 0.5, %v856_v38 }
 0xca6   :  { %v861_v17 = vmul.f32 %v858_v14, %v764_v62 }
 0xd13   :  { %v864_v15 = vpop.permute.xlu1 %863 }
 0xd14   :  { %v866_v16 = vmul.f32 %v864_v15, %v858_v14 }
 0xd16   :  { %868 = vrot.lane.b32.xlu0 %v866_v16, %s2833_s3 }
 0xd88   :  { %v869_v18 = vpop.permute.xlu0 %868 }
 0xd89   :  { %v871_v19 = vadd.f32 %v869_v18, %v861_v17  ;;  %v1100_v18 = vld [vmem:[#allocation5 + $0x8] sm:$0xff] }
 0xd8b   :  { %2694 = vtanh.f32 %v871_v19 }
 0xd8c   :  { %2696 = vtanh.f32 %v853_v23 }
 0xd95   :  { %v2695_v20 = vpop.eup %2694 }
 0xd96   :  { %874 = vrot.lane.b32.xlu1 %v2695_v20, %s2833_s3  ;;  %v2697_v24 = vpop.eup %2696  ;;  %v1099_v20 = vld [vmem:[#allocation5] sm:$0xff] }
 0xd97   :  { %v857_v25 = vmul.f32 0.5, %v2697_v24  ;;  %v1101_v24 = vld [vmem:[#allocation5 + $0x10] sm:$0xff] }
 0xd99   :  { %v859_v26 = vadd.f32 0.5, %v857_v25  ;;  %v1104_v25 = vld [vmem:[#allocation5 + $0x28] sm:$0xff] }
 0xe08   :  { %v875_v27 = vpop.permute.xlu1 %874 }
 0xe09   :  { %v3177_v29 = vmul.f32 %v875_v27, %v859_v26  ;;  %v1106_v26 = vld [vmem:[#allocation5 + $0x38] sm:$0xff]  ;;  %v2460_v27 = vpack.c.bf16 %v1101_v24, %v1099_v20  ;;  %v1140_v24 = vld [vmem:[#allocation7 + $0x48] sm:$0xff] }
 0xe0b   :  { %2260 = vmatmul.mubr.msk.f32.vlgmr.msra.gmra.mrb[4].mxu1 %vm238_vm2, %v3177_v29 }
 0xe0c   :  { %1223 = vmatprep.mubr.f32.mxu1 %v2832_v1 }
 0xede   :  { %v952_v33 = vpop.f32.mrb[4].mxu1 }
 0xedf   :  { %v957_v44 = vadd.f32 %v952_v33, %v225_v32  ;;  %v954_v46 = vpop.f32.mrb[5].mxu1  ;;  %v2462_v32 = vpack.c.bf16 %v1106_v26, %v1104_v25  ;;  %v1103_v33 = vld [vmem:[#allocation5 + $0x20] sm:$0xff]  ;;  %v1142_v25 = vld [vmem:[#allocation7 + $0x58] sm:$0xff]  ;;  %v1128_v26 = vld [vmem:[#allocation5 + $0xe8] sm:$0xff] }
 0xee0   :  { %v958_v47 = vadd.f32 %v954_v46, %v229_v36  ;;  %v1105_v36 = vld [vmem:[#allocation5 + $0x30] sm:$0xff] }
 0xee1   :  { %v959_v51 = vmul.f32 0.5, %v957_v44  ;;  %v1108_v44 = vld [vmem:[#allocation5 + $0x48] sm:$0xff] }
 0xee2   :  { %2698 = vtanh.f32 %v958_v47  ;;  %v960_v61 = vmul.f32 0.5, %v958_v47  ;;  %v1110_v47 = vld [vmem:[#allocation5 + $0x58] sm:$0xff] }
 0xee3   :  { %2700 = vtanh.f32 %v959_v51  ;;  %v2466_v51 = vpack.c.bf16 %v1110_v47, %v1108_v44  ;;  %v1127_v47 = vld [vmem:[#allocation5 + $0xe0] sm:$0xff] }
 0xeec   :  { %v2699_v50 = vpop.eup %2698 }
 0xeed   :  { %970 = vrot.lane.b32.xlu0 %v2699_v50, %s2833_s3  ;;  %v2701_v52 = vpop.eup %2700  ;;  %v2464_v50 = vpack.c.bf16 %v1105_v36, %v1103_v33  ;;  %v1130_v33 = vld [vmem:[#allocation5 + $0xf8] sm:$0xff]  ;;  %v1141_v36 = vld [vmem:[#allocation7 + $0x50] sm:$0xff] }
 0xeee   :  { %v963_v53 = vmul.f32 0.5, %v2701_v52  ;;  %v1107_v52 = vld [vmem:[#allocation5 + $0x40] sm:$0xff]  ;;  %v2486_v44 = vpack.c.bf16 %v1130_v33, %v1128_v26 }
 0xef0   :  { %v965_v54 = vadd.f32 0.5, %v963_v53  ;;  %v1109_v53 = vld [vmem:[#allocation5 + $0x50] sm:$0xff] }
 0xef2   :  { %v968_v57 = vmul.f32 %v965_v54, %v871_v19  ;;  %v1102_v19 = vld [vmem:[#allocation5 + $0x18] sm:$0xff] }
 0xef3   :  { %v2458_v23 = vpack.c.bf16 %v1102_v19, %v1100_v18  ;;  %v1123_v18 = vld [vmem:[#allocation5 + $0xc0] sm:$0xff]  ;;  %v1125_v19 = vld [vmem:[#allocation5 + $0xd0] sm:$0xff] }
 0xef5   :  { %2459 = vmatprep.subr.bf16.mxu1 %v2458_v23  ;;  %v2484_v23 = vpack.c.bf16 %v1125_v19, %v1123_v18 }
 0xef6   :  { %2461 = vmatpush1.bf16.msra.mxu1 %v2460_v27 }
 0xef7   :  { %2463 = vmatprep.subr.bf16.mxu1 %v2462_v32  ;;  %v3242_v32 = vpack.c.bf16 %v1142_v25, %v1140_v24 }
 0xefa   :  { %2465 = vmatpush1.bf16.msra.mxu1 %v2464_v50  ;;  %v1129_v50 = vld [vmem:[#allocation5 + $0xf0] sm:$0xff] }
 0xefb   :  { %2467 = vmatprep.subr.bf16.mxu1 %v2466_v51  ;;  %v1144_v51 = vld [vmem:[#allocation7 + $0x68] sm:$0xff] }
 0xf5f   :  { %v971_v55 = vpop.permute.xlu0 %970 }
 0xf60   :  { %v973_v56 = vmul.f32 %v971_v55, %v965_v54  ;;  %v1112_v54 = vld [vmem:[#allocation5 + $0x68] sm:$0xff]  ;;  %v1114_v55 = vld [vmem:[#allocation5 + $0x78] sm:$0xff] }
 0xf62   :  { %975 = vrot.lane.b32.xlu1 %v973_v56, %s2833_s3  ;;  %v1132_v56 = vld [vmem:[#allocation7 + $0x8] sm:$0xff] }
 0xfd4   :  { %v976_v58 = vpop.permute.xlu1 %975 }
 0xfd5   :  { %v978_v59 = vadd.f32 %v976_v58, %v968_v57  ;;  %v1134_v57 = vld [vmem:[#allocation7 + $0x18] sm:$0xff]  ;;  %v2468_v58 = vpack.c.bf16 %v1109_v53, %v1107_v52  ;;  %v2488_v52 = vpack.c.bf16 %v1129_v50, %v1127_v47 }
 0xfd6   :  { %v1146_v53 = vld [vmem:[#allocation7 + $0x78] sm:$0xff] }
 0xfd7   :  { %2702 = vtanh.f32 %v978_v59  ;;  %2469 = vmatpush1.bf16.msra.mxu1 %v2468_v58 }
 0xfd8   :  { %2704 = vtanh.f32 %v960_v61  ;;  %v1131_v61 = vld [vmem:[#allocation7] sm:$0xff] }
 0xfe1   :  { %v2703_v60 = vpop.eup %2702 }
 0xfe2   :  { %981 = vrot.lane.b32.xlu0 %v2703_v60, %s2833_s3  ;;  %v2705_v62 = vpop.eup %2704  ;;  %v3226_v60 = vpack.c.bf16 %v1134_v57, %v1132_v56  ;;  %v1143_v56 = vld [vmem:[#allocation7 + $0x60] sm:$0xff]  ;;  %v1145_v57 = vld [vmem:[#allocation7 + $0x70] sm:$0xff] }
 0xfe3   :  { %v964_v63 = vmul.f32 0.5, %v2705_v62  ;;  %v1133_v62 = vld [vmem:[#allocation7 + $0x10] sm:$0xff]  ;;  %v3252_v58 = vpack.c.bf16 %v1145_v57, %v1143_v56 }
 0xfe4   :  { %2491 = vmatprep.subr.bf16.mxu0 %v3226_v60 }
 0xfe5   :  { %v966_v0 = vadd.f32 0.5, %v964_v63  ;;  %v1113_v63 = vld [vmem:[#allocation5 + $0x70] sm:$0xff] }
0x1054   :  { %v982_v2 = vpop.permute.xlu0 %981 }
0x1055   :  { %v3192_v3 = vmul.f32 %v982_v2, %v966_v0  ;;  %v3230_v0 = vpack.c.bf16 %v1133_v62, %v1131_v61  ;;  %v1136_v2 = vld [vmem:[#allocation7 + $0x28] sm:$0xff] }
0x1057   :  { %2261 = vmatmul.mubr.msk.f32.vlgmr.msra.gmra.mrb[10].mxu0 %vm238_vm2, %v3192_v3 }
0x1058   :  { %1358 = vmatprep.mubr.f32.mxu0 %v2832_v1  ;;  %2493 = vmatpush1.bf16.msra.mxu0 %v3230_v0 }
0x112a   :  { %v1059_v21 = vpop.f32.mrb[10].mxu0 }
0x112b   :  { %v1064_v22 = vadd.f32 %v1059_v21, %v233_v5  ;;  %v1061_v12 = vpop.f32.mrb[11].mxu0  ;;  %v1138_v5 = vld [vmem:[#allocation7 + $0x38] sm:$0xff]  ;;  %v1116_v21 = vld [vmem:[#allocation5 + $0x88] sm:$0xff] }
0x112c   :  { %v3204_v28 = vadd.f32 %v1061_v12, %v237_v11  ;;  %v1118_v11 = vld [vmem:[#allocation5 + $0x98] sm:$0xff] }
0x112d   :  { %v1066_v31 = vmul.f32 0.5, %v1064_v22  ;;  %v3233_v22 = vpack.c.bf16 %v1138_v5, %v1136_v2 }
0x112e   :  { %2706 = vtanh.f32 %v3204_v28 }
0x112f   :  { %2708 = vtanh.f32 %v1066_v31  ;;  %2495 = vmatprep.subr.bf16.mxu0 %v3233_v22  ;;  %v1117_v31 = vld [vmem:[#allocation5 + $0x90] sm:$0xff] }
0x1138   :  { %v2707_v13 = vpop.eup %2706 }
0x1139   :  { %1077 = vrot.lane.b32.xlu1 %v2707_v13, %s2833_s3  ;;  %v2709_v40 = vpop.eup %2708  ;;  %v1115_v13 = vld [vmem:[#allocation5 + $0x80] sm:$0xff] }
0x113a   :  { %v1070_v34 = vmul.f32 0.5, %v2709_v40  ;;  %v1120_v40 = vld [vmem:[#allocation5 + $0xa8] sm:$0xff] }
0x113c   :  { %v1072_v35 = vadd.f32 0.5, %v1070_v34  ;;  %v1122_v34 = vld [vmem:[#allocation5 + $0xb8] sm:$0xff] }
0x113e   :  { %v1075_v49 = vmul.f32 %v1072_v35, %v978_v59  ;;  %v1111_v59 = vld [vmem:[#allocation5 + $0x60] sm:$0xff] }
0x113f   :  { %v2472_v12 = vpack.c.bf16 %v1113_v63, %v1111_v59 }
0x11ab   :  { %v1078_v38 = vpop.permute.xlu1 %1077 }
0x11ac   :  { %v1080_v48 = vmul.f32 %v1078_v38, %v1072_v35  ;;  %v2476_v35 = vpack.c.bf16 %v1117_v31, %v1115_v13  ;;  %v2478_v38 = vpack.c.bf16 %v1122_v34, %v1120_v40 }
0x11ae   :  { %1082 = vrot.lane.b32.xlu0 %v1080_v48, %s2833_s3  ;;  %v1119_v48 = vld [vmem:[#allocation5 + $0xa0] sm:$0xff] }
0x11b2   :  { %344 = vrot.lane.b32.xlu0 %v3059_v9, %s2833_s3 }
0x11b6   :  { %559 = vrot.lane.b32.xlu0 %v3106_v6, %s2833_s3 }
0x11ba   :  { %773 = vrot.lane.b32.xlu0 %v3155_v8, %s2833_s3 }
0x11be   :  { %987 = vrot.lane.b32.xlu0 %v3192_v3, %s2833_s3 }
0x1220   :  { %v1083_v14 = vpop.permute.xlu0 %1082 }
0x1221   :  { %v1085_v15 = vadd.f32 %v1083_v14, %v1075_v49  ;;  %v1121_v49 = vld [vmem:[#allocation5 + $0xb0] sm:$0xff] }
0x1222   :  { %v2480_v14 = vpack.c.bf16 %v1121_v49, %v1119_v48 }
0x1223   :  { %2710 = vtanh.f32 %v1085_v15  ;;  %v1067_v15 = vmul.f32 0.5, %v3204_v28  ;;  %v1139_v28 = vld [vmem:[#allocation7 + $0x40] sm:$0xff] }
0x1224   :  { %v345_v16 = vpop.permute.xlu0 %344 }
0x1225   :  { %348 = vst.msk [vmem:[#allocation2 + $0x7] sm:$0x1] %vm347_vm3, %v345_v16  ;;  %2712 = vtanh.f32 %v1067_v15  ;;  %v1126_v16 = vld [vmem:[#allocation5 + $0xd8] sm:$0xff] }
0x1228   :  { %v560_v17 = vpop.permute.xlu0 %559 }
0x1229   :  { %562 = vst.msk [vmem:[#allocation2 + $0x5] sm:$0x1] %vm347_vm3, %v560_v17  ;;  %v1135_v17 = vld [vmem:[#allocation7 + $0x20] sm:$0xff] }
0x122a   :  { %878 = vst.msk [vmem:[#allocation2 + $0x5] sm:$0x1] %vm341_vm1, %v3177_v29 }
0x122c   :  { %v774_v9 = vpop.permute.xlu0 %773 }
0x122d   :  { %v2711_v6 = vpop.eup %2710  ;;  %776 = vst.msk [vmem:[#allocation2 + $0x3] sm:$0x1] %vm347_vm3, %v774_v9 }
0x122e   :  { %1088 = vrot.lane.b32.xlu1 %v2711_v6, %s2833_s3  ;;  %v1137_v6 = vld [vmem:[#allocation7 + $0x30] sm:$0xff] }
0x122f   :  { %v3240_v20 = vpack.c.bf16 %v1137_v6, %v1135_v17  ;;  %v2713_v27 = vpop.eup %2712 }
0x1230   :  { %v988_v46 = vpop.permute.xlu0 %987 }
0x1231   :  { %990 = vst.msk [vmem:[#allocation2 + $0x1] sm:$0x1] %vm347_vm3, %v988_v46  ;;  %2497 = vmatpush1.bf16.msra.mxu0 %v3240_v20  ;;  %v3245_v46 = vpack.c.bf16 %v1141_v36, %v1139_v28 }
0x1232   :  { %452 = vrot.lane.b32.xlu1 %v3081_v41, %s2833_s3  ;;  %v2470_v41 = vpack.c.bf16 %v1114_v55, %v1112_v54  ;;  %2499 = vmatprep.subr.bf16.mxu0 %v3242_v32  ;;  %v1071_v54 = vmul.f32 0.5, %v2713_v27  ;;  %v3248_v55 = vpack.c.bf16 %v1146_v53, %v1144_v51 }
0x1234   :  { %2471 = vmatprep.subr.bf16.mxu1 %v2470_v41  ;;  %v1073_v59 = vadd.f32 0.5, %v1071_v54 }
0x1235   :  { %2473 = vmatpush1.bf16.msra.mxu1 %v2472_v12  ;;  %2501 = vmatpush1.bf16.msra.mxu0 %v3245_v46 }
0x1236   :  { %666 = vrot.lane.b32.xlu1 %v3131_v37, %s2833_s3  ;;  %v2474_v37 = vpack.c.bf16 %v1118_v11, %v1116_v21  ;;  %2503 = vmatprep.subr.bf16.mxu0 %v3248_v55  ;;  %v1147_v11 = vld [vmem:[%s3522_s6] sm:$0x3] }
0x1237   :  { %v1152_v12 = vrot.slane %v1147_v11, %v3038_v43 }
0x1238   :  { %2475 = vmatprep.subr.bf16.mxu1 %v2474_v37  ;;  %v1156_v37 = vrot.slane %v1147_v11, %v3044_v45 }
0x1239   :  { %2477 = vmatpush1.bf16.msra.mxu1 %v2476_v35  ;;  %2505 = vmatpush1.bf16.msra.mxu0 %v3252_v58 }
0x123a   :  { %880 = vrot.lane.b32.xlu1 %v3177_v29, %s2833_s3  ;;  %2479 = vmatprep.subr.bf16.mxu1 %v2478_v38  ;;  %v1124_v29 = vld [vmem:[#allocation5 + $0xc8] sm:$0xff] }
0x123b   :  { %v2482_v9 = vpack.c.bf16 %v1126_v16, %v1124_v29  ;;  %2507 = vmatprep.subr.bf16.mxu0 %v3226_v60 }
0x123c   :  { %1359 = vmatmul.mubr.f32.vlgmr.msra.gmra.mrb[12].mxu0 %v2832_v1 }
0x123d   :  { %2481 = vmatpush1.bf16.msra.mxu1 %v2480_v14  ;;  %2509 = vmatpush1.bf16.msra.mxu0 %v3230_v0 }
0x123e   :  { %2483 = vmatprep.subr.bf16.mxu1 %v2482_v9  ;;  %1465 = vmatprep.mubr.f32.mxu0 %v2832_v1 }
0x123f   :  { %2511 = vmatprep.subr.bf16.mxu0 %v3233_v22 }
0x1241   :  { %2485 = vmatpush1.bf16.msra.mxu1 %v2484_v23  ;;  %2513 = vmatpush1.bf16.msra.mxu0 %v3240_v20 }
0x1242   :  { %2487 = vmatprep.subr.bf16.mxu1 %v2486_v44  ;;  %2515 = vmatprep.subr.bf16.mxu0 %v3242_v32 }
0x1245   :  { %2489 = vmatpush1.bf16.msra.mxu1 %v2488_v52  ;;  %2517 = vmatpush1.bf16.msra.mxu0 %v3245_v46 }
0x1246   :  { %2523 = vmatprep.subr.bf16.mxu1 %v3226_v60  ;;  %2519 = vmatprep.subr.bf16.mxu0 %v3248_v55 }
0x1249   :  { %2521 = vmatpush1.bf16.msra.mxu0 %v3252_v58 }
0x124a   :  { %2539 = vmatprep.subr.bf16.mxu0 %v3226_v60 }
0x12a0   :  { %v1089_v61 = vpop.permute.xlu1 %1088 }
0x12a1   :  { %v1091_v62 = vmul.f32 %v1089_v61, %v1073_v59 }
0x12a3   :  { %1092 = vst.msk [vmem:[#allocation2 + $0x7] sm:$0x1] %vm341_vm1, %v1091_v62  ;;  %1094 = vrot.lane.b32.xlu1 %v1091_v62, %s2833_s3 }
0x12a4   :  { %v453_v41 = vpop.permute.xlu1 %452 }
0x12a5   :  { %455 = vst.msk [vmem:[#allocation2 + $0x6] sm:$0x1] %vm347_vm3, %v453_v41 }
0x12a6   :  { %985 = vst.msk [vmem:[#allocation2 + $0x6] sm:$0x1] %vm341_vm1, %v3192_v3 }
0x12a8   :  { %v667_v63 = vpop.permute.xlu1 %666 }
0x12a9   :  { %669 = vst.msk [vmem:[#allocation2 + $0x4] sm:$0x1] %vm347_vm3, %v667_v63 }
0x12aa   :  { %771 = vst.msk [vmem:[#allocation2 + $0x4] sm:$0x1] %vm341_vm1, %v3155_v8 }
0x12ac   :  { %v881_v2 = vpop.permute.xlu1 %880 }
0x12ad   :  { %883 = vst.msk [vmem:[#allocation2 + $0x2] sm:$0x1] %vm347_vm3, %v881_v2 }
0x130f   :  { %v1360_v8 = vpop.f32.mrb[12].mxu0 }
0x1310   :  { %v1362_v21 = vpop.f32.mrb[13].mxu0 }
0x1315   :  { %v1095_v3 = vpop.permute.xlu1 %1094 }
0x1316   :  { %1097 = vst.msk [vmem:[#allocation2] sm:$0x1] %vm347_vm3, %v1095_v3 }
0x131d   :  { %v1098_v5 = vld [vmem:[#allocation2] sm:$0xff] }
0x131e   :  { %1224 = vmatmul.mubr.f32.vlgmr.msra.gmra.mrb[6].mxu1 %v1098_v5 }
0x131f   :  { %2525 = vmatpush1.bf16.msra.mxu1 %v3230_v0  ;;  %1572 = vmatprep.mubr.f32.mxu1 %v2832_v1 }
0x1320   :  { %2527 = vmatprep.subr.bf16.mxu1 %v3233_v22 }
0x1323   :  { %2529 = vmatpush1.bf16.msra.mxu1 %v3240_v20 }
0x1324   :  { %2531 = vmatprep.subr.bf16.mxu1 %v3242_v32 }
0x1327   :  { %2533 = vmatpush1.bf16.msra.mxu1 %v3245_v46 }
0x1328   :  { %2535 = vmatprep.subr.bf16.mxu1 %v3248_v55 }
0x132b   :  { %2537 = vmatpush1.bf16.msra.mxu1 %v3252_v58 }
0x132c   :  { %2555 = vmatprep.subr.bf16.mxu1 %v3226_v60 }
0x13f1   :  { %v1225_v13 = vpop.f32.mrb[6].mxu1 }
0x13f2   :  { %v3291_v31 = vadd.f32 %v1225_v13, %v1152_v12  ;;  %v1227_v40 = vpop.f32.mrb[7].mxu1 }
0x13f3   :  { %v3293_v34 = vadd.f32 %v1227_v40, %v1156_v37 }
0x13f4   :  { %v1233_v35 = vrot.slane %v3291_v31, %v3038_v43  ;;  %v1241_v36 = vrot.slane %v3291_v31, %v3044_v45  ;;  %v1249_v37 = vrot.slane %v3291_v31, %v3097_v42 }
0x13f5   :  { %v1237_v38 = vrot.slane %v3293_v34, %v3038_v43  ;;  %v1245_v47 = vrot.slane %v3293_v34, %v3044_v45  ;;  %v1253_v40 = vrot.slane %v3293_v34, %v3097_v42 }
0x13f6   :  { %v1365_v48 = vadd.f32 %v1360_v8, %v1233_v35 }
0x13f7   :  { %v1366_v49 = vadd.f32 %v1362_v21, %v1237_v38 }
0x13f8   :  { %v1367_v15 = vmul.f32 0.5, %v1365_v48 }
0x13f9   :  { %2714 = vtanh.f32 %v1366_v49  ;;  %v1368_v24 = vmul.f32 0.5, %v1366_v49 }
0x13fa   :  { %2716 = vtanh.f32 %v1367_v15 }
0x1403   :  { %v2715_v14 = vpop.eup %2714 }
0x1404   :  { %1378 = vrot.lane.b32.xlu0 %v2715_v14, %s2833_s3  ;;  %v2717_v29 = vpop.eup %2716 }
0x1405   :  { %v1371_v16 = vmul.f32 0.5, %v2717_v29 }
0x1407   :  { %v1373_v17 = vadd.f32 0.5, %v1371_v16 }
0x1409   :  { %v1376_v18 = vmul.f32 0.0, %v1373_v17 }
0x1476   :  { %v1379_v9 = vpop.permute.xlu0 %1378 }
0x1477   :  { %v1381_v6 = vmul.f32 %v1379_v9, %v1373_v17 }
0x1479   :  { %1383 = vrot.lane.b32.xlu1 %v1381_v6, %s2833_s3 }
0x14eb   :  { %v1384_v19 = vpop.permute.xlu1 %1383 }
0x14ec   :  { %v1386_v23 = vadd.f32 %v1384_v19, %v1376_v18 }
0x14ee   :  { %2718 = vtanh.f32 %v1386_v23 }
0x14ef   :  { %2720 = vtanh.f32 %v1368_v24 }
0x14f8   :  { %v2719_v43 = vpop.eup %2718 }
0x14f9   :  { %1389 = vrot.lane.b32.xlu0 %v2719_v43, %s2833_s3  ;;  %v2721_v25 = vpop.eup %2720 }
0x14fa   :  { %v1372_v26 = vmul.f32 0.5, %v2721_v25 }
0x14fc   :  { %v1374_v27 = vadd.f32 0.5, %v1372_v26 }
0x156b   :  { %v1390_v33 = vpop.permute.xlu0 %1389 }
0x156c   :  { %v3302_v28 = vmul.f32 %v1390_v33, %v1374_v27  ;;  %v1257_v33 = vrot.slane %v3291_v31, %v3122_v7 }
0x156e   :  { %1393 = vst.msk [vmem:[#allocation3] sm:$0x1] %vm341_vm1, %v3302_v28  ;;  %2262 = vmatmul.mubr.msk.f32.vlgmr.msra.gmra.mrb[14].mxu0 %vm238_vm2, %v3302_v28 }
0x156f   :  { %2541 = vmatpush1.bf16.msra.mxu0 %v3230_v0  ;;  %1679 = vmatprep.mubr.f32.mxu0 %v2832_v1 }
0x1570   :  { %2543 = vmatprep.subr.bf16.mxu0 %v3233_v22 }
0x1573   :  { %2545 = vmatpush1.bf16.msra.mxu0 %v3240_v20 }
0x1574   :  { %2547 = vmatprep.subr.bf16.mxu0 %v3242_v32 }
0x1577   :  { %2549 = vmatpush1.bf16.msra.mxu0 %v3245_v46 }
0x1578   :  { %2551 = vmatprep.subr.bf16.mxu0 %v3248_v55 }
0x157b   :  { %2553 = vmatpush1.bf16.msra.mxu0 %v3252_v58 }
0x157c   :  { %2571 = vmatprep.subr.bf16.mxu0 %v3226_v60 }
0x1641   :  { %v1467_v44 = vpop.f32.mrb[14].mxu0 }
0x1642   :  { %v1472_v50 = vadd.f32 %v1467_v44, %v1241_v36  ;;  %v1469_v51 = vpop.f32.mrb[15].mxu0  ;;  %v1261_v44 = vrot.slane %v3293_v34, %v3122_v7 }
0x1643   :  { %v1473_v52 = vadd.f32 %v1469_v51, %v1245_v47 }
0x1644   :  { %v1474_v54 = vmul.f32 0.5, %v1472_v50 }
0x1645   :  { %2722 = vtanh.f32 %v1473_v52  ;;  %v1475_v3 = vmul.f32 0.5, %v1473_v52 }
0x1646   :  { %2724 = vtanh.f32 %v1474_v54 }
0x164f   :  { %v2723_v53 = vpop.eup %2722 }
0x1650   :  { %1485 = vrot.lane.b32.xlu1 %v2723_v53, %s2833_s3  ;;  %v2725_v56 = vpop.eup %2724 }
0x1651   :  { %v1478_v57 = vmul.f32 0.5, %v2725_v56 }
0x1653   :  { %v1480_v59 = vadd.f32 0.5, %v1478_v57 }
0x1655   :  { %v1483_v41 = vmul.f32 %v1480_v59, %v1386_v23 }
0x16c2   :  { %v1486_v61 = vpop.permute.xlu1 %1485 }
0x16c3   :  { %v1488_v62 = vmul.f32 %v1486_v61, %v1480_v59 }
0x16c5   :  { %1490 = vrot.lane.b32.xlu0 %v1488_v62, %s2833_s3 }
0x1737   :  { %v1491_v63 = vpop.permute.xlu0 %1490 }
0x1738   :  { %v1493_v2 = vadd.f32 %v1491_v63, %v1483_v41 }
0x173a   :  { %2726 = vtanh.f32 %v1493_v2 }
0x173b   :  { %2728 = vtanh.f32 %v1475_v3 }
0x1744   :  { %v2727_v45 = vpop.eup %2726 }
0x1745   :  { %1496 = vrot.lane.b32.xlu1 %v2727_v45, %s2833_s3  ;;  %v2729_v5 = vpop.eup %2728 }
0x1746   :  { %v1479_v8 = vmul.f32 0.5, %v2729_v5 }
0x1748   :  { %v1481_v21 = vadd.f32 0.5, %v1479_v8 }
0x17b7   :  { %v1497_v11 = vpop.permute.xlu1 %1496 }
0x17b8   :  { %v3324_v12 = vmul.f32 %v1497_v11, %v1481_v21  ;;  %v1265_v21 = vrot.slane %v3291_v31, %v3146_v39 }
0x17ba   :  { %1500 = vst.msk [vmem:[#allocation3 + $0x1] sm:$0x1] %vm341_vm1, %v3324_v12  ;;  %2263 = vmatmul.mubr.msk.f32.vlgmr.msra.gmra.mrb[8].mxu1 %vm238_vm2, %v3324_v12 }
0x17bb   :  { %2557 = vmatpush1.bf16.msra.mxu1 %v3230_v0  ;;  %1786 = vmatprep.mubr.f32.mxu1 %v2832_v1 }
0x17bc   :  { %2559 = vmatprep.subr.bf16.mxu1 %v3233_v22 }
0x17bf   :  { %2561 = vmatpush1.bf16.msra.mxu1 %v3240_v20 }
0x17c0   :  { %2563 = vmatprep.subr.bf16.mxu1 %v3242_v32 }
0x17c3   :  { %2565 = vmatpush1.bf16.msra.mxu1 %v3245_v46 }
0x17c4   :  { %2567 = vmatprep.subr.bf16.mxu1 %v3248_v55 }
0x17c7   :  { %2569 = vmatpush1.bf16.msra.mxu1 %v3252_v58 }
0x17c8   :  { %2587 = vmatprep.subr.bf16.mxu1 %v3226_v60 }
0x188d   :  { %v1574_v13 = vpop.f32.mrb[8].mxu1 }
0x188e   :  { %v1579_v35 = vadd.f32 %v1574_v13, %v1249_v37  ;;  %v1576_v38 = vpop.f32.mrb[9].mxu1  ;;  %v1269_v37 = vrot.slane %v3293_v34, %v3146_v39 }
0x188f   :  { %v1580_v48 = vadd.f32 %v1576_v38, %v1253_v40 }
0x1890   :  { %v1581_v14 = vmul.f32 0.5, %v1579_v35 }
0x1891   :  { %2730 = vtanh.f32 %v1580_v48  ;;  %v1582_v23 = vmul.f32 0.5, %v1580_v48 }
0x1892   :  { %2732 = vtanh.f32 %v1581_v14 }
0x189b   :  { %v2731_v49 = vpop.eup %2730 }
0x189c   :  { %1592 = vrot.lane.b32.xlu0 %v2731_v49, %s2833_s3  ;;  %v2733_v15 = vpop.eup %2732 }
0x189d   :  { %v1585_v29 = vmul.f32 0.5, %v2733_v15 }
0x189f   :  { %v1587_v16 = vadd.f32 0.5, %v1585_v29 }
0x18a1   :  { %v1590_v6 = vmul.f32 %v1587_v16, %v1493_v2 }
0x190e   :  { %v1593_v17 = vpop.permute.xlu0 %1592 }
0x190f   :  { %v1595_v9 = vmul.f32 %v1593_v17, %v1587_v16 }
0x1911   :  { %1597 = vrot.lane.b32.xlu1 %v1595_v9, %s2833_s3 }
0x1983   :  { %v1598_v18 = vpop.permute.xlu1 %1597 }
0x1984   :  { %v1600_v19 = vadd.f32 %v1598_v18, %v1590_v6 }
0x1986   :  { %2734 = vtanh.f32 %v1600_v19 }
0x1987   :  { %2736 = vtanh.f32 %v1582_v23 }
0x1990   :  { %v2735_v42 = vpop.eup %2734 }
0x1991   :  { %1603 = vrot.lane.b32.xlu0 %v2735_v42, %s2833_s3  ;;  %v2737_v43 = vpop.eup %2736 }
0x1992   :  { %v1586_v24 = vmul.f32 0.5, %v2737_v43 }
0x1994   :  { %v1588_v25 = vadd.f32 0.5, %v1586_v24 }
0x1a03   :  { %v1604_v26 = vpop.permute.xlu0 %1603 }
0x1a04   :  { %v3346_v27 = vmul.f32 %v1604_v26, %v1588_v25  ;;  %v1273_v25 = vrot.slane %v3291_v31, %v3168_v10 }
0x1a06   :  { %1607 = vst.msk [vmem:[#allocation3 + $0x2] sm:$0x1] %vm341_vm1, %v3346_v27  ;;  %2264 = vmatmul.mubr.msk.f32.vlgmr.msra.gmra.mrb[16].mxu0 %vm238_vm2, %v3346_v27 }
0x1a07   :  { %2573 = vmatpush1.bf16.msra.mxu0 %v3230_v0  ;;  %1893 = vmatprep.mubr.f32.mxu0 %v2832_v1 }
0x1a08   :  { %2575 = vmatprep.subr.bf16.mxu0 %v3233_v22 }
0x1a0b   :  { %2577 = vmatpush1.bf16.msra.mxu0 %v3240_v20 }
0x1a0c   :  { %2579 = vmatprep.subr.bf16.mxu0 %v3242_v32 }
0x1a0f   :  { %2581 = vmatpush1.bf16.msra.mxu0 %v3245_v46 }
0x1a10   :  { %2583 = vmatprep.subr.bf16.mxu0 %v3248_v55 }
0x1a13   :  { %2585 = vmatpush1.bf16.msra.mxu0 %v3252_v58 }
0x1a14   :  { %2603 = vmatprep.subr.bf16.mxu0 %v3226_v60 }
0x1ad9   :  { %v1681_v36 = vpop.f32.mrb[16].mxu0 }
0x1ada   :  { %v1686_v47 = vadd.f32 %v1681_v36, %v1257_v33  ;;  %v1683_v50 = vpop.f32.mrb[17].mxu0 }
0x1adb   :  { %v1687_v51 = vadd.f32 %v1683_v50, %v1261_v44 }
0x1adc   :  { %v1688_v53 = vmul.f32 0.5, %v1686_v47 }
0x1add   :  { %2738 = vtanh.f32 %v1687_v51  ;;  %v1689_v63 = vmul.f32 0.5, %v1687_v51 }
0x1ade   :  { %2740 = vtanh.f32 %v1688_v53 }
0x1ae7   :  { %v2739_v52 = vpop.eup %2738 }
0x1ae8   :  { %1699 = vrot.lane.b32.xlu1 %v2739_v52, %s2833_s3  ;;  %v2741_v54 = vpop.eup %2740 }
0x1ae9   :  { %v1692_v56 = vmul.f32 0.5, %v2741_v54 }
0x1aeb   :  { %v1694_v57 = vadd.f32 0.5, %v1692_v56 }
0x1aed   :  { %v1697_v61 = vmul.f32 %v1694_v57, %v1600_v19 }
0x1b5a   :  { %v1700_v60 = vpop.permute.xlu1 %1699 }
0x1b5b   :  { %v1702_v59 = vmul.f32 %v1700_v60, %v1694_v57 }
0x1b5d   :  { %1704 = vrot.lane.b32.xlu0 %v1702_v59, %s2833_s3 }
0x1bcf   :  { %v1705_v62 = vpop.permute.xlu0 %1704 }
0x1bd0   :  { %v1707_v41 = vadd.f32 %v1705_v62, %v1697_v61  ;;  %v1281_v61 = vrot.slane %v3291_v31, %v3183_v30 }
0x1bd2   :  { %2742 = vtanh.f32 %v1707_v41 }
0x1bd3   :  { %2744 = vtanh.f32 %v1689_v63 }
0x1bdc   :  { %v2743_v7 = vpop.eup %2742 }
0x1bdd   :  { %1710 = vrot.lane.b32.xlu1 %v2743_v7, %s2833_s3  ;;  %v2745_v2 = vpop.eup %2744 }
0x1bde   :  { %v1693_v45 = vmul.f32 0.5, %v2745_v2 }
0x1be0   :  { %v1695_v3 = vadd.f32 0.5, %v1693_v45 }
0x1c4f   :  { %v1711_v5 = vpop.permute.xlu1 %1710 }
0x1c50   :  { %v3368_v8 = vmul.f32 %v1711_v5, %v1695_v3 }
0x1c52   :  { %1714 = vst.msk [vmem:[#allocation3 + $0x3] sm:$0x1] %vm341_vm1, %v3368_v8  ;;  %2265 = vmatmul.mubr.msk.f32.vlgmr.msra.gmra.mrb[10].mxu1 %vm238_vm2, %v3368_v8 }
0x1c53   :  { %2589 = vmatpush1.bf16.msra.mxu1 %v3230_v0  ;;  %2000 = vmatprep.mubr.f32.mxu1 %v2832_v1 }
0x1c54   :  { %2591 = vmatprep.subr.bf16.mxu1 %v3233_v22 }
0x1c57   :  { %2593 = vmatpush1.bf16.msra.mxu1 %v3240_v20 }
0x1c58   :  { %2595 = vmatprep.subr.bf16.mxu1 %v3242_v32 }
0x1c5b   :  { %2597 = vmatpush1.bf16.msra.mxu1 %v3245_v46 }
0x1c5c   :  { %2599 = vmatprep.subr.bf16.mxu1 %v3248_v55 }
0x1c5f   :  { %2601 = vmatpush1.bf16.msra.mxu1 %v3252_v58 }
0x1d25   :  { %v1788_v11 = vpop.f32.mrb[10].mxu1 }
0x1d26   :  { %v1793_v13 = vadd.f32 %v1788_v11, %v1265_v21  ;;  %v1790_v40 = vpop.f32.mrb[11].mxu1 }
0x1d27   :  { %v1794_v35 = vadd.f32 %v1790_v40, %v1269_v37 }
0x1d28   :  { %v1795_v48 = vmul.f32 0.5, %v1793_v13 }
0x1d29   :  { %2746 = vtanh.f32 %v1794_v35  ;;  %v1796_v18 = vmul.f32 0.5, %v1794_v35 }
0x1d2a   :  { %2748 = vtanh.f32 %v1795_v48 }
0x1d33   :  { %v2747_v38 = vpop.eup %2746 }
0x1d34   :  { %1806 = vrot.lane.b32.xlu0 %v2747_v38, %s2833_s3  ;;  %v2749_v49 = vpop.eup %2748 }
0x1d35   :  { %v1799_v14 = vmul.f32 0.5, %v2749_v49 }
0x1d37   :  { %v1801_v15 = vadd.f32 0.5, %v1799_v14 }
0x1d39   :  { %v1804_v17 = vmul.f32 %v1801_v15, %v1707_v41  ;;  %v1285_v41 = vrot.slane %v3293_v34, %v3183_v30 }
0x1da6   :  { %v1807_v29 = vpop.permute.xlu0 %1806 }
0x1da7   :  { %v1809_v16 = vmul.f32 %v1807_v29, %v1801_v15 }
0x1da9   :  { %1811 = vrot.lane.b32.xlu1 %v1809_v16, %s2833_s3 }
0x1e1b   :  { %v1812_v9 = vpop.permute.xlu1 %1811 }
0x1e1c   :  { %v1814_v6 = vadd.f32 %v1812_v9, %v1804_v17  ;;  %v1289_v17 = vrot.slane %v3291_v31, %v3198_v4 }
0x1e1e   :  { %2750 = vtanh.f32 %v1814_v6 }
0x1e1f   :  { %2752 = vtanh.f32 %v1796_v18 }
0x1e28   :  { %v2751_v39 = vpop.eup %2750 }
0x1e29   :  { %1817 = vrot.lane.b32.xlu0 %v2751_v39, %s2833_s3  ;;  %v2753_v19 = vpop.eup %2752 }
0x1e2a   :  { %v1800_v42 = vmul.f32 0.5, %v2753_v19 }
0x1e2c   :  { %v1802_v23 = vadd.f32 0.5, %v1800_v42 }
0x1e9b   :  { %v1818_v43 = vpop.permute.xlu0 %1817 }
0x1e9c   :  { %v3389_v24 = vmul.f32 %v1818_v43, %v1802_v23 }
0x1e9e   :  { %2266 = vmatmul.mubr.msk.f32.vlgmr.msra.gmra.mrb[18].mxu0 %vm238_vm2, %v3389_v24 }
0x1e9f   :  { %2605 = vmatpush1.bf16.msra.mxu0 %v3230_v0  ;;  %2107 = vmatprep.mubr.f32.mxu0 %v2832_v1  ;;  %v1277_v0 = vrot.slane %v3293_v34, %v3168_v10 }
0x1ea0   :  { %2607 = vmatprep.subr.bf16.mxu0 %v3233_v22 }
0x1ea3   :  { %2609 = vmatpush1.bf16.msra.mxu0 %v3240_v20 }
0x1ea4   :  { %2611 = vmatprep.subr.bf16.mxu0 %v3242_v32 }
0x1ea7   :  { %2613 = vmatpush1.bf16.msra.mxu0 %v3245_v46 }
0x1ea8   :  { %2615 = vmatprep.subr.bf16.mxu0 %v3248_v55 }
0x1eab   :  { %2617 = vmatpush1.bf16.msra.mxu0 %v3252_v58 }
0x1f71   :  { %v1895_v26 = vpop.f32.mrb[18].mxu0 }
0x1f72   :  { %v1900_v33 = vadd.f32 %v1895_v26, %v1273_v25  ;;  %v1897_v36 = vpop.f32.mrb[19].mxu0 }
0x1f73   :  { %v1901_v22 = vadd.f32 %v1897_v36, %v1277_v0 }
0x1f74   :  { %v1902_v32 = vmul.f32 0.5, %v1900_v33 }
0x1f75   :  { %2754 = vtanh.f32 %v1901_v22  ;;  %v1903_v53 = vmul.f32 0.5, %v1901_v22 }
0x1f76   :  { %2756 = vtanh.f32 %v1902_v32  ;;  %v2150_v32 = vld [vmem:[%s3523_s7 + $0x8] sm:$0xff] }
0x1f7f   :  { %v2755_v20 = vpop.eup %2754 }
0x1f80   :  { %1913 = vrot.lane.b32.xlu1 %v2755_v20, %s2833_s3  ;;  %v2757_v46 = vpop.eup %2756  ;;  %v2149_v20 = vld [vmem:[%s3523_s7] sm:$0xff] }
0x1f81   :  { %v1906_v55 = vmul.f32 0.5, %v2757_v46  ;;  %v2151_v46 = vld [vmem:[%s3523_s7 + $0x10] sm:$0xff] }
0x1f83   :  { %v1908_v44 = vadd.f32 0.5, %v1906_v55  ;;  %v2834_v55 = vmov 0.0|0.0  }
0x1f84   :  { %2618 = vmatprep.subr.bf16.mxu1 %v2834_v55 }
0x1f85   :  { %v1911_v50 = vmul.f32 %v1908_v44, %v1814_v6  ;;  %v1293_v6 = vrot.slane %v3293_v34, %v3198_v4 }
0x1ff2   :  { %v1914_v58 = vpop.permute.xlu1 %1913 }
0x1ff3   :  { %v1916_v47 = vmul.f32 %v1914_v58, %v1908_v44  ;;  %v2619_v44 = vpack.c.bf16 %v2150_v32, %v2149_v20  ;;  %v2152_v58 = vld [vmem:[%s3523_s7 + $0x18] sm:$0xff] }
0x1ff5   :  { %1918 = vrot.lane.b32.xlu0 %v1916_v47, %s2833_s3 }
0x2067   :  { %v1919_v51 = vpop.permute.xlu0 %1918 }
0x2068   :  { %v1921_v52 = vadd.f32 %v1919_v51, %v1911_v50  ;;  %v2622_v50 = vpack.c.bf16 %v2152_v58, %v2151_v46  ;;  %v2153_v51 = vld [vmem:[%s3523_s7 + $0x20] sm:$0xff] }
0x206a   :  { %2758 = vtanh.f32 %v1921_v52 }
0x206b   :  { %2760 = vtanh.f32 %v1903_v53  ;;  %v2155_v53 = vld [vmem:[%s3523_s7 + $0x30] sm:$0xff] }
0x2074   :  { %v2759_v10 = vpop.eup %2758 }
0x2075   :  { %1924 = vrot.lane.b32.xlu1 %v2759_v10, %s2833_s3  ;;  %v2761_v54 = vpop.eup %2760 }
0x2076   :  { %v1907_v56 = vmul.f32 0.5, %v2761_v54  ;;  %v2156_v54 = vld [vmem:[%s3523_s7 + $0x38] sm:$0xff] }
0x2078   :  { %v1909_v57 = vadd.f32 0.5, %v1907_v56  ;;  %v2628_v56 = vpack.c.bf16 %v2156_v54, %v2155_v53 }
0x20e7   :  { %v1925_v60 = vpop.permute.xlu1 %1924 }
0x20e8   :  { %v3408_v59 = vmul.f32 %v1925_v60, %v1909_v57  ;;  %v2158_v57 = vld [vmem:[%s3523_s7 + $0x48] sm:$0xff] }
0x20ea   :  { %2267 = vmatmul.mubr.msk.f32.vlgmr.msra.gmra.mrb[12].mxu1 %vm238_vm2, %v3408_v59 }
0x20eb   :  { %2620 = vmatpush3.bf16.msra.mxu1 %v2619_v44  ;;  %2319 = vmatprep.mubr.msk.f32.mxu1 %vm2835_vm4, %v2832_v1 }
0x20ec   :  { %2621 = vmatprep.subr.bf16.mxu1 %v2834_v55 }
0x20ef   :  { %2623 = vmatpush3.bf16.msra.mxu1 %v2622_v50 }
0x20f0   :  { %2624 = vmatprep.subr.bf16.mxu1 %v2834_v55 }
0x21bd   :  { %v2002_v62 = vpop.f32.mrb[12].mxu1 }
0x21be   :  { %v2007_v7 = vadd.f32 %v2002_v62, %v1281_v61  ;;  %v2004_v63 = vpop.f32.mrb[13].mxu1  ;;  %v2160_v61 = vld [vmem:[%s3523_s7 + $0x58] sm:$0xff] }
0x21bf   :  { %v2008_v2 = vadd.f32 %v2004_v63, %v1285_v41  ;;  %v2163_v63 = vld [vmem:[%s3523_s7 + $0x70] sm:$0xff] }
0x21c0   :  { %v2009_v3 = vmul.f32 0.5, %v2007_v7  ;;  %v2162_v7 = vld [vmem:[%s3523_s7 + $0x68] sm:$0xff] }
0x21c1   :  { %2762 = vtanh.f32 %v2008_v2  ;;  %v2010_v48 = vmul.f32 0.5, %v2008_v2 }
0x21c2   :  { %2764 = vtanh.f32 %v2009_v3 }
0x21cb   :  { %v2763_v45 = vpop.eup %2762 }
0x21cc   :  { %2020 = vrot.lane.b32.xlu0 %v2763_v45, %s2833_s3  ;;  %v2765_v5 = vpop.eup %2764  ;;  %v2164_v45 = vld [vmem:[%s3523_s7 + $0x78] sm:$0xff] }
0x21cd   :  { %v2013_v21 = vmul.f32 0.5, %v2765_v5  ;;  %v2640_v5 = vpack.c.bf16 %v2164_v45, %v2163_v63 }
0x21cf   :  { %v2015_v11 = vadd.f32 0.5, %v2013_v21 }
0x21d1   :  { %v2018_v40 = vmul.f32 %v2015_v11, %v1921_v52  ;;  %v2154_v52 = vld [vmem:[%s3523_s7 + $0x28] sm:$0xff] }
0x21d2   :  { %v2625_v10 = vpack.c.bf16 %v2154_v52, %v2153_v51 }
0x21d4   :  { %2626 = vmatpush3.bf16.msra.mxu1 %v2625_v10 }
0x21d5   :  { %2627 = vmatprep.subr.bf16.mxu1 %v2834_v55 }
0x21d8   :  { %2629 = vmatpush3.bf16.msra.mxu1 %v2628_v56 }
0x21d9   :  { %2630 = vmatprep.subr.bf16.mxu1 %v2834_v55 }
0x223e   :  { %v2021_v37 = vpop.permute.xlu0 %2020 }
0x223f   :  { %v2023_v13 = vmul.f32 %v2021_v37, %v2015_v11 }
0x2241   :  { %2025 = vrot.lane.b32.xlu1 %v2023_v13, %s2833_s3 }
0x22b3   :  { %v2026_v35 = vpop.permute.xlu1 %2025 }
0x22b4   :  { %v2028_v38 = vadd.f32 %v2026_v35, %v2018_v40 }
0x22b6   :  { %2766 = vtanh.f32 %v2028_v38 }
0x22b7   :  { %2768 = vtanh.f32 %v2010_v48  ;;  %v2269_v48 = vld [vmem:[#allocation4] ss:$0 sm:$0xff] }
0x22c0   :  { %v2767_v30 = vpop.eup %2766 }
0x22c1   :  { %2031 = vrot.lane.b32.xlu0 %v2767_v30, %s2833_s3  ;;  %v2769_v49 = vpop.eup %2768 }
0x22c2   :  { %v2014_v14 = vmul.f32 0.5, %v2769_v49 }
0x22c4   :  { %v2016_v15 = vadd.f32 0.5, %v2014_v14 }
0x2333   :  { %v2032_v29 = vpop.permute.xlu0 %2031 }
0x2334   :  { %v3419_v16 = vmul.f32 %v2032_v29, %v2016_v15 }
0x2336   :  { %2268 = vmatmul.mubr.msk.f32.vlgmr.msra.gmra.mrb[20].mxu0 %vm238_vm2, %v3419_v16 }
0x2409   :  { %v2109_v9 = vpop.f32.mrb[20].mxu0 }
0x240a   :  { %v2114_v39 = vadd.f32 %v2109_v9, %v1289_v17  ;;  %v2111_v18 = vpop.f32.mrb[21].mxu0 }
0x240b   :  { %v3427_v19 = vadd.f32 %v2111_v18, %v1293_v6 }
0x240c   :  { %v2116_v23 = vmul.f32 0.5, %v2114_v39 }
0x240d   :  { %2770 = vtanh.f32 %v3427_v19  ;;  %v2117_v41 = vmul.f32 0.5, %v3427_v19 }
0x240e   :  { %2772 = vtanh.f32 %v2116_v23 }
0x2417   :  { %v2771_v42 = vpop.eup %2770 }
0x2418   :  { %2127 = vrot.lane.b32.xlu1 %v2771_v42, %s2833_s3  ;;  %v2773_v43 = vpop.eup %2772 }
0x2419   :  { %v2120_v25 = vmul.f32 0.5, %v2773_v43 }
0x241b   :  { %v2122_v26 = vadd.f32 0.5, %v2120_v25 }
0x241d   :  { %v2125_v4 = vmul.f32 %v2122_v26, %v2028_v38 }
0x248a   :  { %v2128_v0 = vpop.permute.xlu1 %2127 }
0x248b   :  { %v2130_v31 = vmul.f32 %v2128_v0, %v2122_v26 }
0x248d   :  { %2132 = vrot.lane.b32.xlu0 %v2130_v31, %s2833_s3 }
0x2491   :  { %1395 = vrot.lane.b32.xlu0 %v3302_v28, %s2833_s3 }
0x2495   :  { %1609 = vrot.lane.b32.xlu0 %v3346_v27, %s2833_s3 }
0x2499   :  { %1823 = vrot.lane.b32.xlu0 %v3389_v24, %s2833_s3 }
0x249d   :  { %2037 = vrot.lane.b32.xlu0 %v3419_v16, %s2833_s3 }
0x24ff   :  { %v2133_v34 = vpop.permute.xlu0 %2132 }
0x2500   :  { %v2135_v33 = vadd.f32 %v2133_v34, %v2125_v4 }
0x2502   :  { %2774 = vtanh.f32 %v2135_v33 }
0x2503   :  { %v1396_v36 = vpop.permute.xlu0 %1395  ;;  %2776 = vtanh.f32 %v2117_v41 }
0x2504   :  { %1398 = vst.msk [vmem:[#allocation3 + $0x7] sm:$0x1] %vm347_vm3, %v1396_v36 }
0x2507   :  { %v1610_v22 = vpop.permute.xlu0 %1609 }
0x2508   :  { %1612 = vst.msk [vmem:[#allocation3 + $0x5] sm:$0x1] %vm347_vm3, %v1610_v22 }
0x2509   :  { %1928 = vst.msk [vmem:[#allocation3 + $0x5] sm:$0x1] %vm341_vm1, %v3408_v59 }
0x250b   :  { %v1824_v28 = vpop.permute.xlu0 %1823 }
0x250c   :  { %v2775_v27 = vpop.eup %2774  ;;  %1826 = vst.msk [vmem:[#allocation3 + $0x3] sm:$0x1] %vm347_vm3, %v1824_v28 }
0x250d   :  { %2138 = vrot.lane.b32.xlu1 %v2775_v27, %s2833_s3  ;;  %v2777_v3 = vpop.eup %2776 }
0x250e   :  { %v2121_v21 = vmul.f32 0.5, %v2777_v3 }
0x250f   :  { %v2038_v47 = vpop.permute.xlu0 %2037 }
0x2510   :  { %2040 = vst.msk [vmem:[#allocation3 + $0x1] sm:$0x1] %vm347_vm3, %v2038_v47  ;;  %v2123_v11 = vadd.f32 0.5, %v2121_v21 }
0x2511   :  { %1502 = vrot.lane.b32.xlu1 %v3324_v12, %s2833_s3  ;;  %v2157_v12 = vld [vmem:[%s3523_s7 + $0x40] sm:$0xff] }
0x2512   :  { %v2631_v60 = vpack.c.bf16 %v2158_v57, %v2157_v12 }
0x2514   :  { %2632 = vmatpush3.bf16.msra.mxu1 %v2631_v60 }
0x2515   :  { %1716 = vrot.lane.b32.xlu1 %v3368_v8, %s2833_s3  ;;  %v2159_v8 = vld [vmem:[%s3523_s7 + $0x50] sm:$0xff]  ;;  %2633 = vmatprep.subr.bf16.mxu1 %v2834_v55 }
0x2516   :  { %v2634_v62 = vpack.c.bf16 %v2160_v61, %v2159_v8 }
0x2518   :  { %2635 = vmatpush3.bf16.msra.mxu1 %v2634_v62 }
0x2519   :  { %1930 = vrot.lane.b32.xlu1 %v3408_v59, %s2833_s3  ;;  %2636 = vmatprep.subr.bf16.mxu1 %v2834_v55  ;;  %v2161_v59 = vld [vmem:[%s3523_s7 + $0x60] sm:$0xff] }
0x251a   :  { %v2637_v2 = vpack.c.bf16 %v2162_v7, %v2161_v59 }
0x251c   :  { %2638 = vmatpush3.bf16.msra.mxu1 %v2637_v2 }
0x251d   :  { %2639 = vmatprep.subr.bf16.mxu1 %v2834_v55 }
0x2520   :  { %2641 = vmatpush3.bf16.msra.mxu1 %v2640_v5 }
0x257f   :  { %v2139_v37 = vpop.permute.xlu1 %2138 }
0x2580   :  { %v2141_v13 = vmul.f32 %v2139_v37, %v2123_v11 }
0x2582   :  { %2142 = vst.msk [vmem:[#allocation3 + $0x7] sm:$0x1] %vm341_vm1, %v2141_v13  ;;  %2144 = vrot.lane.b32.xlu1 %v2141_v13, %s2833_s3 }
0x2583   :  { %v1503_v40 = vpop.permute.xlu1 %1502 }
0x2584   :  { %1505 = vst.msk [vmem:[#allocation3 + $0x6] sm:$0x1] %vm347_vm3, %v1503_v40 }
0x2585   :  { %2035 = vst.msk [vmem:[#allocation3 + $0x6] sm:$0x1] %vm341_vm1, %v3419_v16 }
0x2587   :  { %v1717_v1 = vpop.permute.xlu1 %1716 }
0x2588   :  { %1719 = vst.msk [vmem:[#allocation3 + $0x4] sm:$0x1] %vm347_vm3, %v1717_v1 }
0x2589   :  { %1821 = vst.msk [vmem:[#allocation3 + $0x4] sm:$0x1] %vm341_vm1, %v3389_v24 }
0x258b   :  { %v1931_v35 = vpop.permute.xlu1 %1930 }
0x258c   :  { %1933 = vst.msk [vmem:[#allocation3 + $0x2] sm:$0x1] %vm347_vm3, %v1931_v35 }
0x25f4   :  { %v2145_v38 = vpop.permute.xlu1 %2144 }
0x25f5   :  { %2147 = vst.msk [vmem:[#allocation3] sm:$0x1] %vm347_vm3, %v2145_v38 }
0x25fc   :  { %v2148_v30 = vld [vmem:[#allocation3] sm:$0xff] }
0x25fd   :  { %2320 = vmatmul.mubr.f32.vlgmr.msra.gmra.mrb[14].mxu1 %v2148_v30 }
0x26d0   :  { %v2238_v49 = vpop.f32.mrb[14].mxu1 }
0x26d1   :  { %v2239_v14 = vadd.f32 %v2269_v48, %v2238_v49  ;;  %v2321_v15 = vpop.f32.mrb[15].mxu1 }
0x26d3   :  { %v2242_v29 = vmul.f32 0.5, %v2239_v14 }
0x26d5   :  { %2778 = vtanh.f32 %v2242_v29 }
0x26df   :  { %v2779_v16 = vpop.eup %2778 }
0x26e0   :  { %v2244_v17 = vmul.f32 0.5, %v2779_v16 }
0x26e2   :  { %v2245_v9 = vadd.f32 0.5, %v2244_v17 }
0x26e4   :  { %2247 = vst.msk [vmem:[%s3525_s9] sm:$0xff] %vm2246_vm5, %v2245_v9 }
0x26e5   :  { %2252 = vsyncpa [#allocation6], 1 }
0x26e6   :  { %2253 = vsyncpa [#allocation8], 1 }

</bundles_post_ra>
